<compile_context>
chip_gen: v5e
topology: v5e:2x2
jax: 0.10.0
libtpu: 0.0.40
codegen_flags: <defaults>
</compile_context>

<pallas_src>
import functools

import jax
import jax.numpy as jnp
from jax.experimental import pallas as pl
from jax.experimental.pallas import tpu as pltpu


def _ff_encoder_kernel(x_ref, w1_ref, b1_ref, w2_ref, b2_ref, w3_ref, b3_ref,
                       o_ref):
    # On-core cast of the fp32 x tile to bf16 (cheap VPU cast, bf16 MXU path).
    x = x_ref[...].astype(jnp.bfloat16)
    # Layer 1: (tm, D) @ (D, 512) -> fp32 acc, +bias, ReLU (fp32 VPU math).
    h1 = jnp.dot(x, w1_ref[...], preferred_element_type=jnp.float32)
    h1 = jnp.maximum(h1 + b1_ref[...], 0.0)
    # Layer 2: (tm, 512) @ (512, 256) -> fp32 acc, +bias, ReLU.
    h2 = jnp.dot(h1.astype(jnp.bfloat16), w2_ref[...],
                 preferred_element_type=jnp.float32)
    h2 = jnp.maximum(h2 + b2_ref[...], 0.0)
    # Layer 3: (tm, 256) @ (256, Lp) -> fp32 acc, +bias. Lp is lane-dense.
    h3 = jnp.dot(h2.astype(jnp.bfloat16), w3_ref[...],
                 preferred_element_type=jnp.float32)
    o_ref[...] = (h3 + b3_ref[...]).astype(o_ref.dtype)


def prepare_params(params):
    """One-time weight preparation (call ONCE, not per forward).

    Casts weights to bf16 for DMA/MXU, keeps biases fp32, and pads the last
    layer's output dim to a multiple of 128 so the kernel's output store is
    lane-dense. Returns (prepared_dict, latent_dims).
    """
    w1 = params["w1"].astype(jnp.bfloat16)
    w2 = params["w2"].astype(jnp.bfloat16)
    w3 = params["w3"].astype(jnp.bfloat16)
    b1 = params["b1"].astype(jnp.float32)
    b2 = params["b2"].astype(jnp.float32)
    b3 = params["b3"].astype(jnp.float32)
    L = w3.shape[1]
    Lp = ((L + 127) // 128) * 128
    if Lp != L:
        w3 = jnp.pad(w3, ((0, 0), (0, Lp - L)))
        b3 = jnp.pad(b3, ((0, 0), (0, Lp - L)))
    prep = {"w1": w1, "b1": b1, "w2": w2, "b2": b2, "w3": w3, "b3": b3}
    return prep, L


def ff_encoder(x, prep, latent_dims, *, tm=512):
    """x: (B, C, H, W) float32. prep: output of prepare_params (bf16 weights)."""
    B = x.shape[0]
    D = functools.reduce(lambda a, b: a * b, x.shape[1:])
    # Row-major flatten == torch Flatten(start_dim=1). No cast here: the fp32
    # tile is DMA'd and cast to bf16 inside the kernel (half the x traffic).
    x_flat = x.reshape(B, D)

    w1, b1 = prep["w1"], prep["b1"]
    w2, b2 = prep["w2"], prep["b2"]
    w3, b3 = prep["w3"], prep["b3"]
    H1, H2, Lp = w1.shape[1], w2.shape[1], w3.shape[1]

    # Batch tiling: large tiles fill the 256-wide MXU and amortize per-step
    # overhead; clamp to B for small batches.
    tm = min(tm, B)
    grid_m = pl.cdiv(B, tm)

    # Weights/biases: constant index_map -> fetched once, VMEM-resident.
    def resident(arr):
        return pl.BlockSpec(arr.shape, lambda i: (0,) * arr.ndim)

    # Megacore: only split the batch across TensorCores when there are enough
    # tiles — otherwise each core would re-DMA its own copy of the resident
    # weights (VMEM is per-core) while the kernel is weight-DMA bound.
    semantics = ("parallel",) if grid_m >= 4 else ("arbitrary",)

    flops = 2 * B * (D * H1 + H1 * H2 + H2 * Lp)
    bytes_accessed = (
        x_flat.size * 4
        + (w1.size + w2.size + w3.size) * 2
        + (b1.size + b2.size + b3.size) * 4
        + B * Lp * 4)

    out = pl.pallas_call(
        _ff_encoder_kernel,
        out_shape=jax.ShapeDtypeStruct((B, Lp), jnp.float32),
        grid=(grid_m,),
        in_specs=[
            pl.BlockSpec((tm, D), lambda i: (i, 0)),   # x: tiled over batch
            resident(w1), resident(b1),
            resident(w2), resident(b2),
            resident(w3), resident(b3),
        ],
        out_specs=pl.BlockSpec((tm, Lp), lambda i: (i, 0)),
        compiler_params=pltpu.CompilerParams(
            dimension_semantics=semantics,
            vmem_limit_bytes=32 << 20,   # ~8-10 MiB needed at tm=512
        ),
        cost_estimate=pl.CostEstimate(
            flops=flops, transcendentals=0, bytes_accessed=bytes_accessed),
    )(x_flat, w1, b1, w2, b2, w3, b3)
    return out[:, :latent_dims]


def init_params(key, total_size, latent_dims):
    """Deterministic init mimicking nn.Linear default (uniform +/- 1/sqrt(fan_in))."""
    ks = jax.random.split(key, 6)

    def lin(kw, kb, fan_in, fan_out):
        bound = 1.0 / jnp.sqrt(fan_in)
        w = jax.random.uniform(kw, (fan_in, fan_out), jnp.float32, -bound, bound)
        b = jax.random.uniform(kb, (1, fan_out), jnp.float32, -bound, bound)
        return w, b

    w1, b1 = lin(ks[0], ks[1], total_size, 512)
    w2, b2 = lin(ks[2], ks[3], 512, 256)
    w3, b3 = lin(ks[4], ks[5], 256, latent_dims)
    return {"w1": w1, "b1": b1, "w2": w2, "b2": b2, "w3": w3, "b3": b3}


if __name__ == "__main__":
    key = jax.random.PRNGKey(0)
    kx, kp = jax.random.split(key)

    # input_size = (4, 16, 16) -> total_size = 1024; latent_dims = 32
    B, C, H, W = 2, 4, 16, 16
    latent_dims = 32
    x = jax.random.normal(kx, (B, C, H, W), jnp.float32)
    params = init_params(kp, C * H * W, latent_dims)

    # One-time weight prep (bf16 cast + lane padding), then the fused kernel.
    prep, L = prepare_params(params)
    out = ff_encoder(x, prep, L)
    out = jax.block_until_ready(out)
    assert out.shape == (B, latent_dims)

    # Reference in plain JAX using the same bf16-rounded operands + fp32 accum.
    bf = lambda a: a.astype(jnp.bfloat16).astype(jnp.float32)
    xf = bf(x.reshape(B, -1))
    h = jnp.maximum(xf @ bf(params["w1"]) + params["b1"], 0.0)
    h = jnp.maximum(bf(h) @ bf(params["w2"]) + params["b2"], 0.0)
    ref = bf(h) @ bf(params["w3"]) + params["b3"]
    assert jnp.allclose(out, ref, atol=2e-2, rtol=2e-2), (
        float(jnp.max(jnp.abs(out - ref))))

    print("KERNEL_OK")
</pallas_src>

<mosaic_0001>
module attributes {stable_mosaic.version = 11 : i64} {
  func.func @_ff_encoder_kernel(%arg0: i32, %arg1: memref<2x1024xf32, #tpu.memory_space<vmem>>, %arg2: memref<1024x512xbf16, #tpu.memory_space<vmem>>, %arg3: memref<1x512xf32, #tpu.memory_space<vmem>>, %arg4: memref<512x256xbf16, #tpu.memory_space<vmem>>, %arg5: memref<1x256xf32, #tpu.memory_space<vmem>>, %arg6: memref<256x128xbf16, #tpu.memory_space<vmem>>, %arg7: memref<1x128xf32, #tpu.memory_space<vmem>>, %arg8: memref<2x128xf32, #tpu.memory_space<vmem>>) attributes {dimension_semantics = [#tpu.dimension_semantics<arbitrary>], iteration_bounds = array<i64: 1>, scalar_prefetch = 0 : i64, scratch_operands = 0 : i64, tpu.core_type = #tpu.core_type<tc>, window_params = [{transform_indices = @transform_0, window_bounds = array<i64: 2, 1024>}, {pipeline_mode = #tpu.pipeline_mode<synchronous>, transform_indices = @transform_1, window_bounds = array<i64: 1024, 512>}, {pipeline_mode = #tpu.pipeline_mode<synchronous>, transform_indices = @transform_2, window_bounds = array<i64: 1, 512>}, {pipeline_mode = #tpu.pipeline_mode<synchronous>, transform_indices = @transform_3, window_bounds = array<i64: 512, 256>}, {pipeline_mode = #tpu.pipeline_mode<synchronous>, transform_indices = @transform_4, window_bounds = array<i64: 1, 256>}, {pipeline_mode = #tpu.pipeline_mode<synchronous>, transform_indices = @transform_5, window_bounds = array<i64: 256, 128>}, {pipeline_mode = #tpu.pipeline_mode<synchronous>, transform_indices = @transform_6, window_bounds = array<i64: 1, 128>}, {transform_indices = @transform_7, window_bounds = array<i64: 2, 128>}]} {
    %c0 = arith.constant 0 : index
    %c0_0 = arith.constant 0 : index
    %0 = vector.load %arg1[%c0, %c0_0] : memref<2x1024xf32, #tpu.memory_space<vmem>>, vector<2x1024xf32>
    %1 = arith.truncf %0 : vector<2x1024xf32> to vector<2x1024xbf16>
    %c0_1 = arith.constant 0 : index
    %c0_2 = arith.constant 0 : index
    %2 = vector.load %arg2[%c0_1, %c0_2] : memref<1024x512xbf16, #tpu.memory_space<vmem>>, vector<1024x512xbf16>
    %cst = arith.constant dense<0.000000e+00> : vector<2x512xf32>
    %3 = tpu.matmul %1, %2, %cst {dimension_numbers = #tpu.dot_dimension_numbers<[1], [0], [0], [1], [0, 0, 1, 1], [], []>} : vector<2x1024xbf16>, vector<1024x512xbf16>, vector<2x512xf32> -> vector<2x512xf32>
    %c0_3 = arith.constant 0 : index
    %c0_4 = arith.constant 0 : index
    %4 = vector.load %arg3[%c0_3, %c0_4] : memref<1x512xf32, #tpu.memory_space<vmem>>, vector<1x512xf32>
    %5 = vector.broadcast %4 : vector<1x512xf32> to vector<2x512xf32>
    %6 = arith.addf %3, %5 : vector<2x512xf32>
    %cst_5 = arith.constant 0.000000e+00 : f32
    %7 = vector.broadcast %cst_5 : f32 to vector<2x512xf32>
    %8 = arith.maximumf %6, %7 : vector<2x512xf32>
    %9 = arith.truncf %8 : vector<2x512xf32> to vector<2x512xbf16>
    %c0_6 = arith.constant 0 : index
    %c0_7 = arith.constant 0 : index
    %10 = vector.load %arg4[%c0_6, %c0_7] : memref<512x256xbf16, #tpu.memory_space<vmem>>, vector<512x256xbf16>
    %cst_8 = arith.constant dense<0.000000e+00> : vector<2x256xf32>
    %11 = tpu.matmul %9, %10, %cst_8 {dimension_numbers = #tpu.dot_dimension_numbers<[1], [0], [0], [1], [0, 0, 1, 1], [], []>} : vector<2x512xbf16>, vector<512x256xbf16>, vector<2x256xf32> -> vector<2x256xf32>
    %c0_9 = arith.constant 0 : index
    %c0_10 = arith.constant 0 : index
    %12 = vector.load %arg5[%c0_9, %c0_10] : memref<1x256xf32, #tpu.memory_space<vmem>>, vector<1x256xf32>
    %13 = vector.broadcast %12 : vector<1x256xf32> to vector<2x256xf32>
    %14 = arith.addf %11, %13 : vector<2x256xf32>
    %cst_11 = arith.constant 0.000000e+00 : f32
    %15 = vector.broadcast %cst_11 : f32 to vector<2x256xf32>
    %16 = arith.maximumf %14, %15 : vector<2x256xf32>
    %17 = arith.truncf %16 : vector<2x256xf32> to vector<2x256xbf16>
    %c0_12 = arith.constant 0 : index
    %c0_13 = arith.constant 0 : index
    %18 = vector.load %arg6[%c0_12, %c0_13] : memref<256x128xbf16, #tpu.memory_space<vmem>>, vector<256x128xbf16>
    %cst_14 = arith.constant dense<0.000000e+00> : vector<2x128xf32>
    %19 = tpu.matmul %17, %18, %cst_14 {dimension_numbers = #tpu.dot_dimension_numbers<[1], [0], [0], [1], [0, 0, 1, 1], [], []>} : vector<2x256xbf16>, vector<256x128xbf16>, vector<2x128xf32> -> vector<2x128xf32>
    %c0_15 = arith.constant 0 : index
    %c0_16 = arith.constant 0 : index
    %20 = vector.load %arg7[%c0_15, %c0_16] : memref<1x128xf32, #tpu.memory_space<vmem>>, vector<1x128xf32>
    %21 = vector.broadcast %20 : vector<1x128xf32> to vector<2x128xf32>
    %22 = arith.addf %19, %21 : vector<2x128xf32>
    %c0_17 = arith.constant 0 : index
    %c0_18 = arith.constant 0 : index
    %23 = vector.load %arg8[%c0_17, %c0_18] : memref<2x128xf32, #tpu.memory_space<vmem>>, vector<2x128xf32>
    tpu.vector_store %arg8[%c0_17, %c0_18], %22 {strides = array<i32>} : memref<2x128xf32, #tpu.memory_space<vmem>>, vector<2x128xf32>,
    return
  }
  func.func @transform_0(%arg0: i32) -> (i32, i32) {
    %c0_i32 = arith.constant 0 : i32
    %c0_i32_0 = arith.constant 0 : i32
    return %arg0, %c0_i32 : i32, i32
  }
  func.func @transform_1(%arg0: i32) -> (i32, i32) {
    %c0_i32 = arith.constant 0 : i32
    %c0_i32_0 = arith.constant 0 : i32
    %c0_i32_1 = arith.constant 0 : i32
    return %c0_i32, %c0_i32_0 : i32, i32
  }
  func.func @transform_2(%arg0: i32) -> (i32, i32) {
    %c0_i32 = arith.constant 0 : i32
    %c0_i32_0 = arith.constant 0 : i32
    %c0_i32_1 = arith.constant 0 : i32
    return %c0_i32, %c0_i32_0 : i32, i32
  }
  func.func @transform_3(%arg0: i32) -> (i32, i32) {
    %c0_i32 = arith.constant 0 : i32
    %c0_i32_0 = arith.constant 0 : i32
    %c0_i32_1 = arith.constant 0 : i32
    return %c0_i32, %c0_i32_0 : i32, i32
  }
  func.func @transform_4(%arg0: i32) -> (i32, i32) {
    %c0_i32 = arith.constant 0 : i32
    %c0_i32_0 = arith.constant 0 : i32
    %c0_i32_1 = arith.constant 0 : i32
    return %c0_i32, %c0_i32_0 : i32, i32
  }
  func.func @transform_5(%arg0: i32) -> (i32, i32) {
    %c0_i32 = arith.constant 0 : i32
    %c0_i32_0 = arith.constant 0 : i32
    %c0_i32_1 = arith.constant 0 : i32
    return %c0_i32, %c0_i32_0 : i32, i32
  }
  func.func @transform_6(%arg0: i32) -> (i32, i32) {
    %c0_i32 = arith.constant 0 : i32
    %c0_i32_0 = arith.constant 0 : i32
    %c0_i32_1 = arith.constant 0 : i32
    return %c0_i32, %c0_i32_0 : i32, i32
  }
  func.func @transform_7(%arg0: i32) -> (i32, i32) {
    %c0_i32 = arith.constant 0 : i32
    %c0_i32_0 = arith.constant 0 : i32
    return %arg0, %c0_i32 : i32, i32
  }
}

</mosaic_0001>

<bundles_post_ra>
// kernel: tpu_custom_call.1
= control target key start
LH: loop header
LB: loop body
LE: loop exit
PB: predicated region body
PF: predicated region fallthrough
CT: control target
= control target key end

     0   :  { %12 = vsyncpa [#allocation3], 0  ;;  %s4782_s0 = inlined_call_operand.hbm [shape: f32[2,1024], index: 0, kind: input, shape index: {}]   ;;  %s4783_s1 = inlined_call_operand.hbm [shape: bf16[1024,512], index: 1, kind: input, shape index: {}]   ;;  %s4784_s2 = inlined_call_operand.hbm [shape: f32[1,512], index: 2, kind: input, shape index: {}]   ;;  %s4785_s3 = inlined_call_operand.hbm [shape: bf16[512,256], index: 3, kind: input, shape index: {}]   ;;  %s4786_s4 = inlined_call_operand.vmem [shape: f32[1,256], index: 4, kind: input, shape index: {}]   ;;  %s4787_s5 = inlined_call_operand.hbm [shape: bf16[256,128], index: 5, kind: input, shape index: {}]   ;;  %s4788_s6 = inlined_call_operand.vmem [shape: f32[1,128], index: 6, kind: input, shape index: {}]   ;;  %s4789_s7 = inlined_call_operand.hbm [shape: f32[2,128], index: 7, kind: output, shape index: {}]  }
   0x1   :  { %13 = vsyncpa [#allocation6], 0 }
   0x2   :  { %14 = vsyncpa [#allocation9], 0  ;;  %s31_s26 = sshll.u32 %s4783_s1, 4  ;;  %s32_s26 = int_to_ptr.hbm [resolvable:$true] %s31_s26 }
   0x3   :  { %15 = vsyncpa [#allocation4], 0  ;;  %s4624_s27 = smov [#allocation5]   ;;  %s55_s8 = sshll.u32 %s4785_s3, 4  ;;  %s56_s8 = int_to_ptr.hbm [resolvable:$true] %s55_s8 }
   0x4   :  { %s33_s28 = sshll.u32 %s4624_s27, 4  ;;  %s4625_s9 = smov 256   ;;  %s34_s28 = int_to_ptr.vmem [resolvable:$true] %s33_s28 }
   0x5   :  { %s4626_s10 = smov 16   ;;  %s4627_s11 = smov [#allocation8]  }
   0x6   :  { %39 = dma.hbm_to_vmem [thread:$0]  %s32_s26, 32768, %s34_s28, [#allocation6], %s4625_s9, %s4625_s9, %s4626_s10  }
   0x7   :  { %s57_s12 = sshll.u32 %s4627_s11, 4  ;;  %s4628_s13 = smov 128   ;;  %s58_s12 = int_to_ptr.vmem [resolvable:$true] %s57_s12 }
   0x8   :  { %s4629_s14 = smov 8   ;;  %s21_s16 = sshll.u32 %s4782_s0, 4  ;;  %s22_s16 = int_to_ptr.hbm [resolvable:$true] %s21_s16 }
   0x9   :  { %63 = dma.hbm_to_vmem [thread:$0]  %s56_s8, 8192, %s58_s12, [#allocation9], %s4628_s13, %s4628_s13, %s4629_s14  }
   0xa   :  { %s4630_s17 = smov [#allocation2]   ;;  %s45_s20 = sshll.u32 %s4784_s2, 4  ;;  %s46_s20 = int_to_ptr.hbm [resolvable:$true] %s45_s20 }
   0xb   :  { %s23_s18 = sshll.u32 %s4630_s17, 4  ;;  %s4631_s21 = smov [#allocation7]   ;;  %s24_s18 = int_to_ptr.vmem [resolvable:$true] %s23_s18 }
   0xc   :  { %26 = dma.hbm_to_vmem [thread:$0]  %s22_s16, 256, %s24_s18, [#allocation3]  }
   0xd   :  { %s47_s22 = sshll.u32 %s4631_s21, 4  ;;  %s70_s25 = sshll.u32 %s4787_s5, 4  ;;  %s48_s22 = int_to_ptr.vmem [resolvable:$true] %s47_s22  ;;  %s71_s25 = int_to_ptr.hbm [resolvable:$true] %s70_s25 }
   0xe   :  { %50 = dma.hbm_to_vmem [thread:$0]  %s46_s20, 64, %s48_s22, [#allocation6]  }
   0xf   :  { %s4632_s0 = smov [#allocation10]   ;;  %s4633_s27 = smov 64  }
  0x10   :  { %s72_s26 = sshll.u32 %s4632_s0, 4  ;;  %s4634_s28 = smov 4   ;;  %s73_s26 = int_to_ptr.vmem [resolvable:$true] %s72_s26 }
  0x11   :  { %78 = dma.hbm_to_vmem [thread:$0]  %s71_s25, 2048, %s73_s26, [#allocation9], %s4633_s27, %s4633_s27, %s4634_s28  }
  0x12   :  { %4616 = dma.done.wait [#allocation3], 256  }
  0x13   :  { %4617 = vsyncadd [#allocation3], 4294967040 }
  0x14   :  { %4618 = dma.done.wait [#allocation6], 32832  }
  0x15   :  { %4619 = vsyncadd [#allocation6], 4294934464 }
  0x16   :  { %4620 = dma.done.wait [#allocation9], 10240  }
  0x17   :  { %4621 = vsyncadd [#allocation9], 4294957056  ;;  %v2892_v0 = vld [vmem:[#allocation5 + $0xe0] sm:$0xf]  ;;  %v4152_v1 = vld [vmem:[#allocation5 + $0xec] sm:$0xf0] }
  0x18   :  { %v3020_v2 = vld [vmem:[#allocation5 + $0x1e0] sm:$0xf]  ;;  %v2893_v3 = vor.u32 %v4152_v1, %v2892_v0  ;;  %v4184_v4 = vld [vmem:[#allocation5 + $0x1ec] sm:$0xf0]  ;;  %s4635_s30 = smov [#allocation11]   ;;  %s2766_s11 = sshll.u32 %s4789_s7, 4  ;;  %s2767_s11 = int_to_ptr.hbm [resolvable:$true] %s2766_s11 }
  0x19   :  { %v3148_v5 = vld [vmem:[#allocation5 + $0x2e0] sm:$0xf]  ;;  %v4216_v6 = vld [vmem:[#allocation5 + $0x2ec] sm:$0xf0]  ;;  %v3021_v7 = vor.u32 %v4184_v4, %v3020_v2  ;;  %s2764_s8 = sshll.u32 %s4635_s30, 4  ;;  %s2765_s8 = int_to_ptr.vmem [resolvable:$true] %s2764_s8 }
  0x1a   :  { %v3149_v8 = vor.u32 %v4216_v6, %v3148_v5  ;;  %v3276_v9 = vld [vmem:[#allocation5 + $0x3e0] sm:$0xf]  ;;  %v4248_v10 = vld [vmem:[#allocation5 + $0x3ec] sm:$0xf0]  ;;  %1678 = vmatpush.bf16.msra.mxu0 %v2893_v3 }
  0x1b   :  { %v2876_v11 = vld [vmem:[#allocation5 + $0xc0] sm:$0xf]  ;;  %v3277_v12 = vor.u32 %v4248_v10, %v3276_v9  ;;  %v4148_v13 = vld [vmem:[#allocation5 + $0xcc] sm:$0xf0]  ;;  %1691 = vmatpush.bf16.msra.mxu1 %v3021_v7 }
  0x1c   :  { %v3004_v14 = vld [vmem:[#allocation5 + $0x1c0] sm:$0xf]  ;;  %v4180_v15 = vld [vmem:[#allocation5 + $0x1cc] sm:$0xf0]  ;;  %1704 = vmatpush.bf16.msra.mxu2 %v3149_v8  ;;  %v2877_v16 = vor.u32 %v4148_v13, %v2876_v11 }
  0x1d   :  { %v3005_v17 = vor.u32 %v4180_v15, %v3004_v14  ;;  %v3132_v18 = vld [vmem:[#allocation5 + $0x2c0] sm:$0xf]  ;;  %v4212_v19 = vld [vmem:[#allocation5 + $0x2cc] sm:$0xf0]  ;;  %1717 = vmatpush.bf16.msra.mxu3 %v3277_v12 }
  0x1e   :  { %v3260_v20 = vld [vmem:[#allocation5 + $0x3c0] sm:$0xf]  ;;  %v3133_v21 = vor.u32 %v4212_v19, %v3132_v18  ;;  %v4244_v22 = vld [vmem:[#allocation5 + $0x3cc] sm:$0xf0]  ;;  %1679 = vmatpush.bf16.msra.mxu0 %v2877_v16 }
  0x1f   :  { %v2860_v23 = vld [vmem:[#allocation5 + $0xa0] sm:$0xf]  ;;  %v4144_v24 = vld [vmem:[#allocation5 + $0xac] sm:$0xf0]  ;;  %v3261_v25 = vor.u32 %v4244_v22, %v3260_v20  ;;  %1692 = vmatpush.bf16.msra.mxu1 %v3005_v17 }
  0x20   :  { %v2988_v26 = vld [vmem:[#allocation5 + $0x1a0] sm:$0xf]  ;;  %v4176_v27 = vld [vmem:[#allocation5 + $0x1ac] sm:$0xf0]  ;;  %v2861_v29 = vor.u32 %v4144_v24, %v2860_v23  ;;  %1705 = vmatpush.bf16.msra.mxu2 %v3133_v21 }
  0x21   :  { %v3116_v28 = vld [vmem:[#allocation5 + $0x2a0] sm:$0xf]  ;;  %v4208_v30 = vld [vmem:[#allocation5 + $0x2ac] sm:$0xf0]  ;;  %v2989_v33 = vor.u32 %v4176_v27, %v2988_v26  ;;  %1718 = vmatpush.bf16.msra.mxu3 %v3261_v25 }
  0x22   :  { %v3244_v31 = vld [vmem:[#allocation5 + $0x3a0] sm:$0xf]  ;;  %v4240_v32 = vld [vmem:[#allocation5 + $0x3ac] sm:$0xf0]  ;;  %v3117_v34 = vor.u32 %v4208_v30, %v3116_v28  ;;  %1680 = vmatpush.bf16.msra.mxu0 %v2861_v29 }
  0x23   :  { %v2844_v35 = vld [vmem:[#allocation5 + $0x80] sm:$0xf]  ;;  %v4140_v36 = vld [vmem:[#allocation5 + $0x8c] sm:$0xf0]  ;;  %v3245_v38 = vor.u32 %v4240_v32, %v3244_v31  ;;  %1693 = vmatpush.bf16.msra.mxu1 %v2989_v33 }
  0x24   :  { %v2972_v37 = vld [vmem:[#allocation5 + $0x180] sm:$0xf]  ;;  %v4172_v39 = vld [vmem:[#allocation5 + $0x18c] sm:$0xf0]  ;;  %v2845_v44 = vor.u32 %v4140_v36, %v2844_v35  ;;  %1706 = vmatpush.bf16.msra.mxu2 %v3117_v34 }
  0x25   :  { %v3100_v40 = vld [vmem:[#allocation5 + $0x280] sm:$0xf]  ;;  %v4204_v41 = vld [vmem:[#allocation5 + $0x28c] sm:$0xf0]  ;;  %v2973_v45 = vor.u32 %v4172_v39, %v2972_v37  ;;  %1719 = vmatpush.bf16.msra.mxu3 %v3245_v38 }
  0x26   :  { %v3228_v42 = vld [vmem:[#allocation5 + $0x380] sm:$0xf]  ;;  %v4236_v43 = vld [vmem:[#allocation5 + $0x38c] sm:$0xf0]  ;;  %v3101_v46 = vor.u32 %v4204_v41, %v3100_v40  ;;  %1681 = vmatpush.bf16.msra.mxu0 %v2845_v44 }
  0x27   :  { %v2828_v47 = vld [vmem:[#allocation5 + $0x60] sm:$0xf]  ;;  %v4136_v48 = vld [vmem:[#allocation5 + $0x6c] sm:$0xf0]  ;;  %v3229_v50 = vor.u32 %v4236_v43, %v3228_v42  ;;  %1694 = vmatpush.bf16.msra.mxu1 %v2973_v45 }
  0x28   :  { %v2956_v49 = vld [vmem:[#allocation5 + $0x160] sm:$0xf]  ;;  %v4168_v51 = vld [vmem:[#allocation5 + $0x16c] sm:$0xf0]  ;;  %v2829_v56 = vor.u32 %v4136_v48, %v2828_v47  ;;  %1707 = vmatpush.bf16.msra.mxu2 %v3101_v46 }
  0x29   :  { %v3084_v52 = vld [vmem:[#allocation5 + $0x260] sm:$0xf]  ;;  %v4200_v53 = vld [vmem:[#allocation5 + $0x26c] sm:$0xf0]  ;;  %v2957_v57 = vor.u32 %v4168_v51, %v2956_v49  ;;  %1720 = vmatpush.bf16.msra.mxu3 %v3229_v50 }
  0x2a   :  { %v3212_v54 = vld [vmem:[#allocation5 + $0x360] sm:$0xf]  ;;  %v4232_v55 = vld [vmem:[#allocation5 + $0x36c] sm:$0xf0]  ;;  %v3085_v58 = vor.u32 %v4200_v53, %v3084_v52  ;;  %1682 = vmatpush.bf16.msra.mxu0 %v2829_v56 }
  0x2b   :  { %v2812_v59 = vld [vmem:[#allocation5 + $0x40] sm:$0xf]  ;;  %v4132_v60 = vld [vmem:[#allocation5 + $0x4c] sm:$0xf0]  ;;  %v3213_v62 = vor.u32 %v4232_v55, %v3212_v54  ;;  %1695 = vmatpush.bf16.msra.mxu1 %v2957_v57 }
  0x2c   :  { %v2940_v61 = vld [vmem:[#allocation5 + $0x140] sm:$0xf]  ;;  %v4164_v63 = vld [vmem:[#allocation5 + $0x14c] sm:$0xf0]  ;;  %v2813_v4 = vor.u32 %v4132_v60, %v2812_v59  ;;  %1708 = vmatpush.bf16.msra.mxu2 %v3085_v58 }
  0x2d   :  { %v3068_v0 = vld [vmem:[#allocation5 + $0x240] sm:$0xf]  ;;  %v4196_v1 = vld [vmem:[#allocation5 + $0x24c] sm:$0xf0]  ;;  %v2941_v5 = vor.u32 %v4164_v63, %v2940_v61  ;;  %1721 = vmatpush.bf16.msra.mxu3 %v3213_v62 }
  0x2e   :  { %v3196_v2 = vld [vmem:[#allocation5 + $0x340] sm:$0xf]  ;;  %v4228_v3 = vld [vmem:[#allocation5 + $0x34c] sm:$0xf0]  ;;  %v3069_v6 = vor.u32 %v4196_v1, %v3068_v0  ;;  %1683 = vmatpush.bf16.msra.mxu0 %v2813_v4 }
  0x2f   :  { %v2796_v7 = vld [vmem:[#allocation5 + $0x20] sm:$0xf]  ;;  %v4128_v8 = vld [vmem:[#allocation5 + $0x2c] sm:$0xf0]  ;;  %v3197_v10 = vor.u32 %v4228_v3, %v3196_v2  ;;  %1696 = vmatpush.bf16.msra.mxu1 %v2941_v5 }
  0x30   :  { %v2924_v9 = vld [vmem:[#allocation5 + $0x120] sm:$0xf]  ;;  %v4160_v11 = vld [vmem:[#allocation5 + $0x12c] sm:$0xf0]  ;;  %v2797_v16 = vor.u32 %v4128_v8, %v2796_v7  ;;  %1709 = vmatpush.bf16.msra.mxu2 %v3069_v6 }
  0x31   :  { %v3052_v12 = vld [vmem:[#allocation5 + $0x220] sm:$0xf]  ;;  %v4192_v13 = vld [vmem:[#allocation5 + $0x22c] sm:$0xf0]  ;;  %v2925_v19 = vor.u32 %v4160_v11, %v2924_v9  ;;  %1722 = vmatpush.bf16.msra.mxu3 %v3197_v10 }
  0x32   :  { %v3180_v14 = vld [vmem:[#allocation5 + $0x320] sm:$0xf]  ;;  %v4224_v15 = vld [vmem:[#allocation5 + $0x32c] sm:$0xf0]  ;;  %v3053_v20 = vor.u32 %v4192_v13, %v3052_v12  ;;  %1684 = vmatpush.bf16.msra.mxu0 %v2797_v16 }
  0x33   :  { %v2780_v17 = vld [vmem:[#allocation5] sm:$0xf]  ;;  %v4124_v18 = vld [vmem:[#allocation5 + $0xc] sm:$0xf0]  ;;  %v3181_v24 = vor.u32 %v4224_v15, %v3180_v14  ;;  %1697 = vmatpush.bf16.msra.mxu1 %v2925_v19 }
  0x34   :  { %v2908_v21 = vld [vmem:[#allocation5 + $0x100] sm:$0xf]  ;;  %v4156_v22 = vld [vmem:[#allocation5 + $0x10c] sm:$0xf0]  ;;  %v2781_v31 = vor.u32 %v4124_v18, %v2780_v17  ;;  %1710 = vmatpush.bf16.msra.mxu2 %v3053_v20 }
  0x35   :  { %v3036_v23 = vld [vmem:[#allocation5 + $0x200] sm:$0xf]  ;;  %v4188_v25 = vld [vmem:[#allocation5 + $0x20c] sm:$0xf0]  ;;  %v2909_v35 = vor.u32 %v4156_v22, %v2908_v21  ;;  %1723 = vmatpush.bf16.msra.mxu3 %v3181_v24 }
  0x36   :  { %v3164_v26 = vld [vmem:[#allocation5 + $0x300] sm:$0xf]  ;;  %v4220_v27 = vld [vmem:[#allocation5 + $0x30c] sm:$0xf0]  ;;  %v3037_v36 = vor.u32 %v4188_v25, %v3036_v23  ;;  %1685 = vmatpush.bf16.msra.mxu0 %v2781_v31 }
  0x37   :  { %v3404_v28 = vld [vmem:[#allocation5 + $0x4e0] sm:$0xf]  ;;  %v4280_v29 = vld [vmem:[#allocation5 + $0x4ec] sm:$0xf0]  ;;  %v3165_v39 = vor.u32 %v4220_v27, %v3164_v26  ;;  %1698 = vmatpush.bf16.msra.mxu1 %v2909_v35 }
  0x38   :  { %v3532_v30 = vld [vmem:[#allocation5 + $0x5e0] sm:$0xf]  ;;  %v4312_v32 = vld [vmem:[#allocation5 + $0x5ec] sm:$0xf0]  ;;  %v3405_v40 = vor.u32 %v4280_v29, %v3404_v28  ;;  %1711 = vmatpush.bf16.msra.mxu2 %v3037_v36 }
  0x39   :  { %v3660_v33 = vld [vmem:[#allocation5 + $0x6e0] sm:$0xf]  ;;  %v4344_v34 = vld [vmem:[#allocation5 + $0x6ec] sm:$0xf0]  ;;  %v3533_v41 = vor.u32 %v4312_v32, %v3532_v30  ;;  %1724 = vmatpush.bf16.msra.mxu3 %v3165_v39 }
  0x3a   :  { %v3788_v37 = vld [vmem:[#allocation5 + $0x7e0] sm:$0xf]  ;;  %v4376_v38 = vld [vmem:[#allocation5 + $0x7ec] sm:$0xf0]  ;;  %v3661_v42 = vor.u32 %v4344_v34, %v3660_v33  ;;  %1730 = vmatpush.bf16.msrb.mxu0 %v3405_v40 }
  0x3b   :  { %v3388_v43 = vld [vmem:[#allocation5 + $0x4c0] sm:$0xf]  ;;  %v4276_v44 = vld [vmem:[#allocation5 + $0x4cc] sm:$0xf0]  ;;  %v3789_v46 = vor.u32 %v4376_v38, %v3788_v37  ;;  %1743 = vmatpush.bf16.msrb.mxu1 %v3533_v41 }
  0x3c   :  { %v3516_v45 = vld [vmem:[#allocation5 + $0x5c0] sm:$0xf]  ;;  %v4308_v47 = vld [vmem:[#allocation5 + $0x5cc] sm:$0xf0]  ;;  %v3389_v52 = vor.u32 %v4276_v44, %v3388_v43  ;;  %1756 = vmatpush.bf16.msrb.mxu2 %v3661_v42 }
  0x3d   :  { %v3644_v48 = vld [vmem:[#allocation5 + $0x6c0] sm:$0xf]  ;;  %v4340_v49 = vld [vmem:[#allocation5 + $0x6cc] sm:$0xf0]  ;;  %v3517_v53 = vor.u32 %v4308_v47, %v3516_v45  ;;  %1769 = vmatpush.bf16.msrb.mxu3 %v3789_v46 }
  0x3e   :  { %v3772_v50 = vld [vmem:[#allocation5 + $0x7c0] sm:$0xf]  ;;  %v4372_v51 = vld [vmem:[#allocation5 + $0x7cc] sm:$0xf0]  ;;  %v3645_v54 = vor.u32 %v4340_v49, %v3644_v48  ;;  %1731 = vmatpush.bf16.msrb.mxu0 %v3389_v52  ;;  %v102_v52 = vld [vmem:[#allocation2 + $0x8] sm:$0xff] }
  0x3f   :  { %v3372_v55 = vld [vmem:[#allocation5 + $0x4a0] sm:$0xf]  ;;  %v4272_v56 = vld [vmem:[#allocation5 + $0x4ac] sm:$0xf0]  ;;  %v3773_v58 = vor.u32 %v4372_v51, %v3772_v50  ;;  %1744 = vmatpush.bf16.msrb.mxu1 %v3517_v53  ;;  %107 = vst [vmem:[#allocation1 + $0x20] ss:$4 sm:$0xff] %v102_v52 }
  0x40   :  { %v3500_v57 = vld [vmem:[#allocation5 + $0x5a0] sm:$0xf]  ;;  %v4304_v59 = vld [vmem:[#allocation5 + $0x5ac] sm:$0xf0]  ;;  %v3373_v0 = vor.u32 %v4272_v56, %v3372_v55  ;;  %1757 = vmatpush.bf16.msrb.mxu2 %v3645_v54  ;;  %v4238_v52 = vld [vmem:[#allocation5 + $0x3a4] sm:$0xf] }
  0x41   :  { %v3628_v60 = vld [vmem:[#allocation5 + $0x6a0] sm:$0xf]  ;;  %v4336_v61 = vld [vmem:[#allocation5 + $0x6ac] sm:$0xf0]  ;;  %v3501_v3 = vor.u32 %v4304_v59, %v3500_v57  ;;  %1770 = vmatpush.bf16.msrb.mxu3 %v3773_v58 }
  0x42   :  { %v3756_v62 = vld [vmem:[#allocation5 + $0x7a0] sm:$0xf]  ;;  %v4368_v63 = vld [vmem:[#allocation5 + $0x7ac] sm:$0xf0]  ;;  %v3629_v4 = vor.u32 %v4336_v61, %v3628_v60  ;;  %1732 = vmatpush.bf16.msrb.mxu0 %v3373_v0 }
  0x43   :  { %v3356_v1 = vld [vmem:[#allocation5 + $0x480] sm:$0xf]  ;;  %v101_v2 = vld [vmem:[#allocation2] sm:$0xff]  ;;  %v3757_v7 = vor.u32 %v4368_v63, %v3756_v62  ;;  %1745 = vmatpush.bf16.msrb.mxu1 %v3501_v3 }
  0x44   :  { %v4268_v5 = vld [vmem:[#allocation5 + $0x48c] sm:$0xf0]  ;;  %v3484_v6 = vld [vmem:[#allocation5 + $0x580] sm:$0xf]  ;;  %105 = vst [vmem:[#allocation1] ss:$4 sm:$0xff] %v101_v2  ;;  %1758 = vmatpush.bf16.msrb.mxu2 %v3629_v4 }
  0x45   :  { %v4300_v8 = vld [vmem:[#allocation5 + $0x58c] sm:$0xf0]  ;;  %v3612_v9 = vld [vmem:[#allocation5 + $0x680] sm:$0xf]  ;;  %v3357_v13 = vor.u32 %v4268_v5, %v3356_v1  ;;  %1771 = vmatpush.bf16.msrb.mxu3 %v3757_v7  ;;  %v2894_v7 = vld [vmem:[#allocation5 + $0xf0] sm:$0xf0] }
  0x46   :  { %v4332_v10 = vld [vmem:[#allocation5 + $0x68c] sm:$0xf0]  ;;  %v3740_v11 = vld [vmem:[#allocation5 + $0x780] sm:$0xf]  ;;  %v3485_v15 = vor.u32 %v4300_v8, %v3484_v6  ;;  %v4150_v6 = vld [vmem:[#allocation5 + $0xe4] sm:$0xf] }
  0x47   :  { %v4364_v12 = vld [vmem:[#allocation5 + $0x78c] sm:$0xf0]  ;;  %v3340_v14 = vld [vmem:[#allocation5 + $0x460] sm:$0xf]  ;;  %v3613_v16 = vor.u32 %v4332_v10, %v3612_v9  ;;  %1733 = vmatpush.bf16.msrb.mxu0 %v3357_v13  ;;  %v4182_v8 = vld [vmem:[#allocation5 + $0x1e4] sm:$0xf] }
  0x48   :  { %v4264_v17 = vld [vmem:[#allocation5 + $0x46c] sm:$0xf0]  ;;  %v3468_v18 = vld [vmem:[#allocation5 + $0x560] sm:$0xf]  ;;  %v3741_v20 = vor.u32 %v4364_v12, %v3740_v11  ;;  %1746 = vmatpush.bf16.msrb.mxu1 %v3485_v15  ;;  %v3022_v9 = vld [vmem:[#allocation5 + $0x1f0] sm:$0xf0] }
  0x49   :  { %v4296_v19 = vld [vmem:[#allocation5 + $0x56c] sm:$0xf0]  ;;  %v3596_v21 = vld [vmem:[#allocation5 + $0x660] sm:$0xf]  ;;  %v3341_v27 = vor.u32 %v4264_v17, %v3340_v14  ;;  %1759 = vmatpush.bf16.msrb.mxu2 %v3613_v16  ;;  %v4214_v10 = vld [vmem:[#allocation5 + $0x2e4] sm:$0xf] }
  0x4a   :  { %v4328_v22 = vld [vmem:[#allocation5 + $0x66c] sm:$0xf0]  ;;  %v3724_v23 = vld [vmem:[#allocation5 + $0x760] sm:$0xf]  ;;  %v3469_v28 = vor.u32 %v4296_v19, %v3468_v18  ;;  %1772 = vmatpush.bf16.msrb.mxu3 %v3741_v20  ;;  %v3150_v12 = vld [vmem:[#allocation5 + $0x2f0] sm:$0xf0] }
  0x4b   :  { %v4360_v24 = vld [vmem:[#allocation5 + $0x76c] sm:$0xf0]  ;;  %v3324_v25 = vld [vmem:[#allocation5 + $0x440] sm:$0xf]  ;;  %v3597_v32 = vor.u32 %v4328_v22, %v3596_v21  ;;  %1734 = vmatpush.bf16.msrb.mxu0 %v3341_v27  ;;  %v4246_v13 = vld [vmem:[#allocation5 + $0x3e4] sm:$0xf]  ;;  %v2897_v21 = vor.u32 %v4150_v6, %v2894_v7 }
  0x4c   :  { %v4260_v26 = vld [vmem:[#allocation5 + $0x44c] sm:$0xf0]  ;;  %v3452_v29 = vld [vmem:[#allocation5 + $0x540] sm:$0xf]  ;;  %v3725_v37 = vor.u32 %v4360_v24, %v3724_v23  ;;  %1747 = vmatpush.bf16.msrb.mxu1 %v3469_v28  ;;  %v3278_v14 = vld [vmem:[#allocation5 + $0x3f0] sm:$0xf0]  ;;  %v3025_v24 = vor.u32 %v4182_v8, %v3022_v9 }
  0x4d   :  { %v110_v30 = vld.sshfl [vmem:[#allocation1 + $0x10] sm:$0xff pattern:$0x73625140]  ;;  %v108_v31 = vld.sshfl [vmem:[#allocation1] sm:$0xff pattern:$0x73625140]  ;;  %v3325_v45 = vor.u32 %v4260_v26, %v3324_v25  ;;  %1760 = vmatpush.bf16.msrb.mxu2 %v3597_v32  ;;  %v3153_v25 = vor.u32 %v4214_v10, %v3150_v12  ;;  %v3281_v28 = vor.u32 %v4246_v13, %v3278_v14 }
  0x4e   :  { %v4691_v33 = vpack.c.bf16 %v110_v30, %v110_v30  ;;  %v4693_v34 = vpack.c.bf16 %v108_v31, %v108_v31  ;;  %v111_v35 = vld.sshfl [vmem:[#allocation1 + $0x18] sm:$0xff pattern:$0x73625140]  ;;  %v109_v36 = vld.sshfl [vmem:[#allocation1 + $0x8] sm:$0xff pattern:$0x73625140]  ;;  %1773 = vmatpush.bf16.msrb.mxu3 %v3725_v37 }
  0x4f   :  { %v4292_v38 = vld [vmem:[#allocation5 + $0x54c] sm:$0xf0]  ;;  %v3580_v39 = vld [vmem:[#allocation5 + $0x640] sm:$0xf]  ;;  %v4695_v41 = vpack.c.bf16 %v111_v35, %v111_v35  ;;  %v4697_v42 = vpack.c.bf16 %v109_v36, %v109_v36  ;;  %1735 = vmatpush.bf16.msrb.mxu0 %v3325_v45  ;;  %v4146_v17 = vld [vmem:[#allocation5 + $0xc4] sm:$0xf] }
  0x50   :  { %v4324_v40 = vld [vmem:[#allocation5 + $0x64c] sm:$0xf0]  ;;  %v3708_v43 = vld [vmem:[#allocation5 + $0x740] sm:$0xf]  ;;  %1712 = vmatmul.bf16.vlgmr.msra.gmra.mxu2 %v4691_v33  ;;  %1686 = vmatmul.bf16.vlgmr.msra.gmra.mxu0 %v4693_v34  ;;  %v3453_v48 = vor.u32 %v4292_v38, %v3452_v29  ;;  %v2878_v18 = vld [vmem:[#allocation5 + $0xd0] sm:$0xf0] }
  0x51   :  { %v4356_v44 = vld [vmem:[#allocation5 + $0x74c] sm:$0xf0]  ;;  %1725 = vmatmul.bf16.vlgmr.msra.gmra.mxu3 %v4695_v41  ;;  %v3308_v46 = vld [vmem:[#allocation5 + $0x420] sm:$0xf]  ;;  %v3581_v49 = vor.u32 %v4324_v40, %v3580_v39  ;;  %1699 = vmatmul.bf16.vlgmr.msra.gmra.mxu1 %v4697_v42  ;;  %v4178_v26 = vld [vmem:[#allocation5 + $0x1c4] sm:$0xf]  ;;  %v2881_v39 = vor.u32 %v4146_v17, %v2878_v18 }
  0x52   :  { %v4256_v47 = vld [vmem:[#allocation5 + $0x42c] sm:$0xf0]  ;;  %v3436_v50 = vld [vmem:[#allocation5 + $0x520] sm:$0xf]  ;;  %v3709_v53 = vor.u32 %v4356_v44, %v3708_v43  ;;  %1748 = vmatpush.bf16.msrb.mxu1 %v3453_v48  ;;  %v3006_v29 = vld [vmem:[#allocation5 + $0x1d0] sm:$0xf0] }
  0x53   :  { %v4288_v51 = vld [vmem:[#allocation5 + $0x52c] sm:$0xf0]  ;;  %v3564_v54 = vld [vmem:[#allocation5 + $0x620] sm:$0xf]  ;;  %v3309_v59 = vor.u32 %v4256_v47, %v3308_v46  ;;  %1761 = vmatpush.bf16.msrb.mxu2 %v3581_v49  ;;  %v4210_v30 = vld [vmem:[#allocation5 + $0x2c4] sm:$0xf]  ;;  %v3009_v43 = vor.u32 %v4178_v26, %v3006_v29 }
  0x54   :  { %v4320_v55 = vld [vmem:[#allocation5 + $0x62c] sm:$0xf0]  ;;  %v3692_v56 = vld [vmem:[#allocation5 + $0x720] sm:$0xf]  ;;  %v3437_v63 = vor.u32 %v4288_v51, %v3436_v50  ;;  %1774 = vmatpush.bf16.msrb.mxu3 %v3709_v53  ;;  %v3134_v31 = vld [vmem:[#allocation5 + $0x2d0] sm:$0xf0] }
  0x55   :  { %v4352_v57 = vld [vmem:[#allocation5 + $0x72c] sm:$0xf0]  ;;  %v3292_v58 = vld [vmem:[#allocation5 + $0x400] sm:$0xf]  ;;  %v3565_v0 = vor.u32 %v4320_v55, %v3564_v54  ;;  %1736 = vmatpush.bf16.msrb.mxu0 %v3309_v59  ;;  %v4242_v35 = vld [vmem:[#allocation5 + $0x3c4] sm:$0xf]  ;;  %v3137_v44 = vor.u32 %v4210_v30, %v3134_v31 }
  0x56   :  { %v4252_v60 = vld [vmem:[#allocation5 + $0x40c] sm:$0xf0]  ;;  %v3420_v61 = vld [vmem:[#allocation5 + $0x500] sm:$0xf]  ;;  %v3693_v4 = vor.u32 %v4352_v57, %v3692_v56  ;;  %1749 = vmatpush.bf16.msrb.mxu1 %v3437_v63  ;;  %v3262_v36 = vld [vmem:[#allocation5 + $0x3d0] sm:$0xf0] }
  0x57   :  { %v4284_v62 = vld [vmem:[#allocation5 + $0x50c] sm:$0xf0]  ;;  %v3548_v1 = vld [vmem:[#allocation5 + $0x600] sm:$0xf]  ;;  %v3293_v11 = vor.u32 %v4252_v60, %v3292_v58  ;;  %1762 = vmatpush.bf16.msrb.mxu2 %v3565_v0  ;;  %v4142_v45 = vld [vmem:[#allocation5 + $0xa4] sm:$0xf]  ;;  %v3265_v48 = vor.u32 %v4242_v35, %v3262_v36 }
  0x58   :  { %v4316_v2 = vld [vmem:[#allocation5 + $0x60c] sm:$0xf0]  ;;  %v3676_v3 = vld [vmem:[#allocation5 + $0x700] sm:$0xf]  ;;  %v3421_v15 = vor.u32 %v4284_v62, %v3420_v61  ;;  %1775 = vmatpush.bf16.msrb.mxu3 %v3693_v4  ;;  %v2862_v46 = vld [vmem:[#allocation5 + $0xb0] sm:$0xf0] }
  0x59   :  { %v4348_v5 = vld [vmem:[#allocation5 + $0x70c] sm:$0xf0]  ;;  %v3549_v16 = vor.u32 %v4316_v2, %v3548_v1  ;;  %v114_v19 = vld.sshfl [vmem:[#allocation1 + $0x30] sm:$0xff pattern:$0x73625140]  ;;  %1737 = vmatpush.bf16.msrb.mxu0 %v3293_v11  ;;  %v2865_v54 = vor.u32 %v4142_v45, %v2862_v46 }
  0x5a   :  { %v3677_v20 = vor.u32 %v4348_v5, %v3676_v3  ;;  %v112_v22 = vld.sshfl [vmem:[#allocation1 + $0x20] sm:$0xff pattern:$0x73625140]  ;;  %v115_v23 = vld.sshfl [vmem:[#allocation1 + $0x38] sm:$0xff pattern:$0x73625140]  ;;  %v4703_v32 = vpack.c.bf16 %v114_v19, %v114_v19  ;;  %1750 = vmatpush.bf16.msrb.mxu1 %v3421_v15 }
  0x5b   :  { %v113_v27 = vld.sshfl [vmem:[#allocation1 + $0x28] sm:$0xff pattern:$0x73625140]  ;;  %1763 = vmatpush.bf16.msrb.mxu2 %v3549_v16  ;;  %v4705_v37 = vpack.c.bf16 %v112_v22, %v112_v22  ;;  %v4707_v38 = vpack.c.bf16 %v115_v23, %v115_v23  ;;  %v4174_v47 = vld [vmem:[#allocation5 + $0x1a4] sm:$0xf] }
  0x5c   :  { %1776 = vmatpush.bf16.msrb.mxu3 %v3677_v20  ;;  %v4709_v40 = vpack.c.bf16 %v113_v27, %v113_v27  ;;  %v2990_v49 = vld [vmem:[#allocation5 + $0x1b0] sm:$0xf0]  ;;  %v4206_v50 = vld [vmem:[#allocation5 + $0x2a4] sm:$0xf] }
  0x5d   :  { %1782 = vmatpush.bf16.msra.mxu0 %v2897_v21  ;;  %v3118_v51 = vld [vmem:[#allocation5 + $0x2b0] sm:$0xf0]  ;;  %v2993_v55 = vor.u32 %v4174_v47, %v2990_v49  ;;  %v4138_v57 = vld [vmem:[#allocation5 + $0x84] sm:$0xf] }
  0x5e   :  { %1795 = vmatpush.bf16.msra.mxu1 %v3025_v24  ;;  %v3246_v53 = vld [vmem:[#allocation5 + $0x3b0] sm:$0xf0]  ;;  %v3121_v56 = vor.u32 %v4206_v50, %v3118_v51  ;;  %v4170_v59 = vld [vmem:[#allocation5 + $0x184] sm:$0xf] }
  0x5f   :  { %1808 = vmatpush.bf16.msra.mxu2 %v3153_v25  ;;  %v2846_v58 = vld [vmem:[#allocation5 + $0x90] sm:$0xf0]  ;;  %v3249_v60 = vor.u32 %v4238_v52, %v3246_v53  ;;  %v4202_v62 = vld [vmem:[#allocation5 + $0x284] sm:$0xf] }
  0x60   :  { %1821 = vmatpush.bf16.msra.mxu3 %v3281_v28  ;;  %1764 = vmatmul.bf16.vlgmr.msrb.gmra.mxu2 %v4703_v32  ;;  %v2974_v61 = vld [vmem:[#allocation5 + $0x190] sm:$0xf0]  ;;  %v4234_v0 = vld [vmem:[#allocation5 + $0x384] sm:$0xf]  ;;  %v2849_v2 = vor.u32 %v4138_v57, %v2846_v58 }
  0x61   :  { %1738 = vmatmul.bf16.vlgmr.msrb.gmra.mxu0 %v4705_v37  ;;  %1777 = vmatmul.bf16.vlgmr.msrb.gmra.mxu3 %v4707_v38  ;;  %v3102_v63 = vld [vmem:[#allocation5 + $0x290] sm:$0xf0]  ;;  %v2977_v3 = vor.u32 %v4170_v59, %v2974_v61  ;;  %v4134_v5 = vld [vmem:[#allocation5 + $0x64] sm:$0xf] }
  0x62   :  { %1783 = vmatpush.bf16.msra.mxu0 %v2881_v39  ;;  %1751 = vmatmul.bf16.vlgmr.msrb.gmra.mxu1 %v4709_v40  ;;  %v3230_v1 = vld [vmem:[#allocation5 + $0x390] sm:$0xf0]  ;;  %v3105_v4 = vor.u32 %v4202_v62, %v3102_v63  ;;  %v4166_v7 = vld [vmem:[#allocation5 + $0x164] sm:$0xf] }
  0x63   :  { %1796 = vmatpush.bf16.msra.mxu1 %v3009_v43  ;;  %1809 = vmatpush.bf16.msra.mxu2 %v3137_v44  ;;  %v2830_v6 = vld [vmem:[#allocation5 + $0x70] sm:$0xf0]  ;;  %v3233_v8 = vor.u32 %v4234_v0, %v3230_v1  ;;  %v4198_v10 = vld [vmem:[#allocation5 + $0x264] sm:$0xf] }
  0x64   :  { %1822 = vmatpush.bf16.msra.mxu3 %v3265_v48  ;;  %v2958_v9 = vld [vmem:[#allocation5 + $0x170] sm:$0xf0]  ;;  %v4230_v12 = vld [vmem:[#allocation5 + $0x364] sm:$0xf]  ;;  %v2833_v14 = vor.u32 %v4134_v5, %v2830_v6 }
  0x65   :  { %v3086_v11 = vld [vmem:[#allocation5 + $0x270] sm:$0xf0]  ;;  %v2961_v15 = vor.u32 %v4166_v7, %v2958_v9  ;;  %v4130_v17 = vld [vmem:[#allocation5 + $0x44] sm:$0xf] }
  0x66   :  { %1784 = vmatpush.bf16.msra.mxu0 %v2865_v54  ;;  %v3214_v13 = vld [vmem:[#allocation5 + $0x370] sm:$0xf0]  ;;  %v3089_v16 = vor.u32 %v4198_v10, %v3086_v11  ;;  %v4162_v19 = vld [vmem:[#allocation5 + $0x144] sm:$0xf] }
  0x67   :  { %1797 = vmatpush.bf16.msra.mxu1 %v2993_v55  ;;  %1810 = vmatpush.bf16.msra.mxu2 %v3121_v56  ;;  %v2814_v18 = vld [vmem:[#allocation5 + $0x50] sm:$0xf0]  ;;  %v3217_v20 = vor.u32 %v4230_v12, %v3214_v13  ;;  %v4194_v22 = vld [vmem:[#allocation5 + $0x244] sm:$0xf] }
  0x68   :  { %1823 = vmatpush.bf16.msra.mxu3 %v3249_v60  ;;  %v2942_v21 = vld [vmem:[#allocation5 + $0x150] sm:$0xf0]  ;;  %v4226_v24 = vld [vmem:[#allocation5 + $0x344] sm:$0xf]  ;;  %v2817_v26 = vor.u32 %v4130_v17, %v2814_v18 }
  0x69   :  { %v3070_v23 = vld [vmem:[#allocation5 + $0x250] sm:$0xf0]  ;;  %v2945_v27 = vor.u32 %v4162_v19, %v2942_v21  ;;  %v4126_v29 = vld [vmem:[#allocation5 + $0x24] sm:$0xf] }
  0x6a   :  { %1785 = vmatpush.bf16.msra.mxu0 %v2849_v2  ;;  %v3198_v25 = vld [vmem:[#allocation5 + $0x350] sm:$0xf0]  ;;  %v3073_v28 = vor.u32 %v4194_v22, %v3070_v23  ;;  %v4158_v31 = vld [vmem:[#allocation5 + $0x124] sm:$0xf] }
  0x6b   :  { %1798 = vmatpush.bf16.msra.mxu1 %v2977_v3  ;;  %1811 = vmatpush.bf16.msra.mxu2 %v3105_v4  ;;  %v2798_v30 = vld [vmem:[#allocation5 + $0x30] sm:$0xf0]  ;;  %v3201_v35 = vor.u32 %v4226_v24, %v3198_v25  ;;  %v4190_v39 = vld [vmem:[#allocation5 + $0x224] sm:$0xf] }
  0x6c   :  { %1824 = vmatpush.bf16.msra.mxu3 %v3233_v8  ;;  %v2926_v36 = vld [vmem:[#allocation5 + $0x130] sm:$0xf0]  ;;  %v4222_v44 = vld [vmem:[#allocation5 + $0x324] sm:$0xf]  ;;  %v2801_v46 = vor.u32 %v4126_v29, %v2798_v30 }
  0x6d   :  { %v3054_v43 = vld [vmem:[#allocation5 + $0x230] sm:$0xf0]  ;;  %v4122_v47 = vld [vmem:[#allocation5 + $0x4] sm:$0xf]  ;;  %v2929_v49 = vor.u32 %v4158_v31, %v2926_v36 }
  0x6e   :  { %1786 = vmatpush.bf16.msra.mxu0 %v2833_v14  ;;  %v3182_v45 = vld [vmem:[#allocation5 + $0x330] sm:$0xf0]  ;;  %v3057_v50 = vor.u32 %v4190_v39, %v3054_v43  ;;  %v4154_v51 = vld [vmem:[#allocation5 + $0x104] sm:$0xf] }
  0x6f   :  { %1799 = vmatpush.bf16.msra.mxu1 %v2961_v15  ;;  %1812 = vmatpush.bf16.msra.mxu2 %v3089_v16  ;;  %v2782_v48 = vld [vmem:[#allocation5 + $0x10] sm:$0xf0]  ;;  %v4186_v53 = vld [vmem:[#allocation5 + $0x204] sm:$0xf]  ;;  %v3185_v54 = vor.u32 %v4222_v44, %v3182_v45 }
  0x70   :  { %1825 = vmatpush.bf16.msra.mxu3 %v3217_v20  ;;  %v2910_v52 = vld [vmem:[#allocation5 + $0x110] sm:$0xf0]  ;;  %v4218_v56 = vld [vmem:[#allocation5 + $0x304] sm:$0xf]  ;;  %v2785_v61 = vor.u32 %v4122_v47, %v2782_v48 }
  0x71   :  { %v3038_v55 = vld [vmem:[#allocation5 + $0x210] sm:$0xf0]  ;;  %v4278_v58 = vld [vmem:[#allocation5 + $0x4e4] sm:$0xf]  ;;  %v2913_v1 = vor.u32 %v4154_v51, %v2910_v52 }
  0x72   :  { %1787 = vmatpush.bf16.msra.mxu0 %v2817_v26  ;;  %v3166_v57 = vld [vmem:[#allocation5 + $0x310] sm:$0xf0]  ;;  %v4310_v60 = vld [vmem:[#allocation5 + $0x5e4] sm:$0xf]  ;;  %v3041_v2 = vor.u32 %v4186_v53, %v3038_v55 }
  0x73   :  { %1800 = vmatpush.bf16.msra.mxu1 %v2945_v27  ;;  %1813 = vmatpush.bf16.msra.mxu2 %v3073_v28  ;;  %v3406_v59 = vld [vmem:[#allocation5 + $0x4f0] sm:$0xf0]  ;;  %v4342_v63 = vld [vmem:[#allocation5 + $0x6e4] sm:$0xf]  ;;  %v3169_v5 = vor.u32 %v4218_v56, %v3166_v57 }
  0x74   :  { %1826 = vmatpush.bf16.msra.mxu3 %v3201_v35  ;;  %v3534_v62 = vld [vmem:[#allocation5 + $0x5f0] sm:$0xf0]  ;;  %v4374_v3 = vld [vmem:[#allocation5 + $0x7e4] sm:$0xf]  ;;  %v3409_v6 = vor.u32 %v4278_v58, %v3406_v59 }
  0x75   :  { %v3662_v0 = vld [vmem:[#allocation5 + $0x6f0] sm:$0xf0]  ;;  %v3537_v7 = vor.u32 %v4310_v60, %v3534_v62  ;;  %v4274_v9 = vld [vmem:[#allocation5 + $0x4c4] sm:$0xf] }
  0x76   :  { %1788 = vmatpush.bf16.msra.mxu0 %v2801_v46  ;;  %v3790_v4 = vld [vmem:[#allocation5 + $0x7f0] sm:$0xf0]  ;;  %v3665_v8 = vor.u32 %v4342_v63, %v3662_v0  ;;  %v4306_v11 = vld [vmem:[#allocation5 + $0x5c4] sm:$0xf] }
  0x77   :  { %1801 = vmatpush.bf16.msra.mxu1 %v2929_v49  ;;  %1814 = vmatpush.bf16.msra.mxu2 %v3057_v50  ;;  %v3390_v10 = vld [vmem:[#allocation5 + $0x4d0] sm:$0xf0]  ;;  %v3793_v12 = vor.u32 %v4374_v3, %v3790_v4  ;;  %v4338_v14 = vld [vmem:[#allocation5 + $0x6c4] sm:$0xf] }
  0x78   :  { %1827 = vmatpush.bf16.msra.mxu3 %v3185_v54  ;;  %v3518_v13 = vld [vmem:[#allocation5 + $0x5d0] sm:$0xf0]  ;;  %v4370_v16 = vld [vmem:[#allocation5 + $0x7c4] sm:$0xf]  ;;  %v3393_v18 = vor.u32 %v4274_v9, %v3390_v10 }
  0x79   :  { %v3646_v15 = vld [vmem:[#allocation5 + $0x6d0] sm:$0xf0]  ;;  %v3521_v19 = vor.u32 %v4306_v11, %v3518_v13  ;;  %v4270_v21 = vld [vmem:[#allocation5 + $0x4a4] sm:$0xf] }
  0x7a   :  { %1789 = vmatpush.bf16.msra.mxu0 %v2785_v61  ;;  %v3774_v17 = vld [vmem:[#allocation5 + $0x7d0] sm:$0xf0]  ;;  %v3649_v20 = vor.u32 %v4338_v14, %v3646_v15  ;;  %v4302_v23 = vld [vmem:[#allocation5 + $0x5a4] sm:$0xf] }
  0x7b   :  { %1802 = vmatpush.bf16.msra.mxu1 %v2913_v1  ;;  %1815 = vmatpush.bf16.msra.mxu2 %v3041_v2  ;;  %v3374_v22 = vld [vmem:[#allocation5 + $0x4b0] sm:$0xf0]  ;;  %v3777_v24 = vor.u32 %v4370_v16, %v3774_v17  ;;  %v4334_v26 = vld [vmem:[#allocation5 + $0x6a4] sm:$0xf] }
  0x7c   :  { %1828 = vmatpush.bf16.msra.mxu3 %v3169_v5  ;;  %v3502_v25 = vld [vmem:[#allocation5 + $0x5b0] sm:$0xf0]  ;;  %v4366_v28 = vld [vmem:[#allocation5 + $0x7a4] sm:$0xf]  ;;  %v3377_v30 = vor.u32 %v4270_v21, %v3374_v22 }
  0x7d   :  { %v3630_v27 = vld [vmem:[#allocation5 + $0x6b0] sm:$0xf0]  ;;  %1790 = vmatmul.bf16.vlgmr.msra.gmra.mxu0 %v4693_v34  ;;  %v3505_v31 = vor.u32 %v4302_v23, %v3502_v25  ;;  %v4266_v36 = vld [vmem:[#allocation5 + $0x484] sm:$0xf] }
  0x7e   :  { %1834 = vmatpush.bf16.msrb.mxu0 %v3409_v6  ;;  %1816 = vmatmul.bf16.vlgmr.msra.gmra.mxu2 %v4691_v33  ;;  %v3758_v29 = vld [vmem:[#allocation5 + $0x7b0] sm:$0xf0]  ;;  %v3633_v35 = vor.u32 %v4334_v26, %v3630_v27  ;;  %v4298_v43 = vld [vmem:[#allocation5 + $0x584] sm:$0xf] }
  0x7f   :  { %1847 = vmatpush.bf16.msrb.mxu1 %v3537_v7  ;;  %1860 = vmatpush.bf16.msrb.mxu2 %v3665_v8  ;;  %v3358_v39 = vld [vmem:[#allocation5 + $0x490] sm:$0xf0]  ;;  %v3761_v44 = vor.u32 %v4366_v28, %v3758_v29  ;;  %v4330_v46 = vld [vmem:[#allocation5 + $0x684] sm:$0xf] }
  0x80   :  { %1873 = vmatpush.bf16.msrb.mxu3 %v3793_v12  ;;  %1803 = vmatmul.bf16.vlgmr.msra.gmra.mxu1 %v4697_v42  ;;  %v3486_v45 = vld [vmem:[#allocation5 + $0x590] sm:$0xf0]  ;;  %v4362_v48 = vld [vmem:[#allocation5 + $0x784] sm:$0xf]  ;;  %v3361_v50 = vor.u32 %v4266_v36, %v3358_v39  ;;  %v2900_v39 = vld [vmem:[#allocation5 + $0xe8] sm:$0xf] }
  0x81   :  { %1829 = vmatmul.bf16.vlgmr.msra.gmra.mxu3 %v4695_v41  ;;  %v3614_v47 = vld [vmem:[#allocation5 + $0x690] sm:$0xf0]  ;;  %v3489_v51 = vor.u32 %v4298_v43, %v3486_v45  ;;  %v4262_v53 = vld [vmem:[#allocation5 + $0x464] sm:$0xf]  ;;  %v4153_v43 = vld [vmem:[#allocation5 + $0xf4] sm:$0xf0] }
  0x82   :  { %1835 = vmatpush.bf16.msrb.mxu0 %v3393_v18  ;;  %v3742_v49 = vld [vmem:[#allocation5 + $0x790] sm:$0xf0]  ;;  %v3617_v52 = vor.u32 %v4330_v46, %v3614_v47  ;;  %v4294_v55 = vld [vmem:[#allocation5 + $0x564] sm:$0xf]  ;;  %v4185_v46 = vld [vmem:[#allocation5 + $0x1f4] sm:$0xf0] }
  0x83   :  { %1848 = vmatpush.bf16.msrb.mxu1 %v3521_v19  ;;  %1861 = vmatpush.bf16.msrb.mxu2 %v3649_v20  ;;  %v3342_v54 = vld [vmem:[#allocation5 + $0x470] sm:$0xf0]  ;;  %v3745_v56 = vor.u32 %v4362_v48, %v3742_v49  ;;  %v4326_v58 = vld [vmem:[#allocation5 + $0x664] sm:$0xf]  ;;  %v3156_v47 = vld [vmem:[#allocation5 + $0x2e8] sm:$0xf] }
  0x84   :  { %1874 = vmatpush.bf16.msrb.mxu3 %v3777_v24  ;;  %v3470_v57 = vld [vmem:[#allocation5 + $0x570] sm:$0xf0]  ;;  %v4358_v60 = vld [vmem:[#allocation5 + $0x764] sm:$0xf]  ;;  %v3345_v62 = vor.u32 %v4262_v53, %v3342_v54  ;;  %v4217_v48 = vld [vmem:[#allocation5 + $0x2f4] sm:$0xf0]  ;;  %v2901_v54 = vor.u32 %v4153_v43, %v2900_v39 }
  0x85   :  { %v3598_v59 = vld [vmem:[#allocation5 + $0x670] sm:$0xf0]  ;;  %v3473_v63 = vor.u32 %v4294_v55, %v3470_v57  ;;  %v4258_v1 = vld [vmem:[#allocation5 + $0x444] sm:$0xf]  ;;  %v2884_v57 = vld [vmem:[#allocation5 + $0xc8] sm:$0xf] }
  0x86   :  { %1836 = vmatpush.bf16.msrb.mxu0 %v3377_v30  ;;  %v3726_v61 = vld [vmem:[#allocation5 + $0x770] sm:$0xf0]  ;;  %v3601_v0 = vor.u32 %v4326_v58, %v3598_v59  ;;  %v4290_v3 = vld [vmem:[#allocation5 + $0x544] sm:$0xf]  ;;  %v4149_v58 = vld [vmem:[#allocation5 + $0xd4] sm:$0xf0] }
  0x87   :  { %1849 = vmatpush.bf16.msrb.mxu1 %v3505_v31  ;;  %1862 = vmatpush.bf16.msrb.mxu2 %v3633_v35  ;;  %v3326_v2 = vld [vmem:[#allocation5 + $0x450] sm:$0xf0]  ;;  %v3729_v4 = vor.u32 %v4358_v60, %v3726_v61  ;;  %v4322_v6 = vld [vmem:[#allocation5 + $0x644] sm:$0xf]  ;;  %v3012_v59 = vld [vmem:[#allocation5 + $0x1c8] sm:$0xf] }
  0x88   :  { %1875 = vmatpush.bf16.msrb.mxu3 %v3761_v44  ;;  %v3454_v5 = vld [vmem:[#allocation5 + $0x550] sm:$0xf0]  ;;  %v4354_v8 = vld [vmem:[#allocation5 + $0x744] sm:$0xf]  ;;  %v3329_v10 = vor.u32 %v4258_v1, %v3326_v2  ;;  %v3028_v44 = vld [vmem:[#allocation5 + $0x1e8] sm:$0xf]  ;;  %v2885_v2 = vor.u32 %v4149_v58, %v2884_v57 }
  0x89   :  { %v3582_v7 = vld [vmem:[#allocation5 + $0x650] sm:$0xf0]  ;;  %v3457_v11 = vor.u32 %v4290_v3, %v3454_v5  ;;  %v4254_v13 = vld [vmem:[#allocation5 + $0x424] sm:$0xf]  ;;  %v3029_v55 = vor.u32 %v4185_v46, %v3028_v44  ;;  %v4181_v61 = vld [vmem:[#allocation5 + $0x1d4] sm:$0xf0] }
  0x8a   :  { %1837 = vmatpush.bf16.msrb.mxu0 %v3361_v50  ;;  %v3710_v9 = vld [vmem:[#allocation5 + $0x750] sm:$0xf0]  ;;  %v3585_v12 = vor.u32 %v4322_v6, %v3582_v7  ;;  %v4286_v15 = vld [vmem:[#allocation5 + $0x524] sm:$0xf]  ;;  %v4245_v1 = vld [vmem:[#allocation5 + $0x3d4] sm:$0xf0]  ;;  %v3013_v3 = vor.u32 %v4181_v61, %v3012_v59 }
  0x8b   :  { %1850 = vmatpush.bf16.msrb.mxu1 %v3489_v51  ;;  %1863 = vmatpush.bf16.msrb.mxu2 %v3617_v52  ;;  %v3310_v14 = vld [vmem:[#allocation5 + $0x430] sm:$0xf0]  ;;  %v3713_v16 = vor.u32 %v4354_v8, %v3710_v9  ;;  %v4318_v18 = vld [vmem:[#allocation5 + $0x624] sm:$0xf]  ;;  %v3284_v51 = vld [vmem:[#allocation5 + $0x3e8] sm:$0xf] }
  0x8c   :  { %1876 = vmatpush.bf16.msrb.mxu3 %v3745_v56  ;;  %v3438_v17 = vld [vmem:[#allocation5 + $0x530] sm:$0xf0]  ;;  %v4350_v20 = vld [vmem:[#allocation5 + $0x724] sm:$0xf]  ;;  %v3313_v22 = vor.u32 %v4254_v13, %v3310_v14  ;;  %v4249_v52 = vld [vmem:[#allocation5 + $0x3f4] sm:$0xf0]  ;;  %v3157_v56 = vor.u32 %v4217_v48, %v3156_v47 }
  0x8d   :  { %v3566_v19 = vld [vmem:[#allocation5 + $0x630] sm:$0xf0]  ;;  %v4250_v23 = vld [vmem:[#allocation5 + $0x404] sm:$0xf]  ;;  %v3441_v25 = vor.u32 %v4286_v15, %v3438_v17  ;;  %v3285_v60 = vor.u32 %v4249_v52, %v3284_v51  ;;  %v2868_v5 = vld [vmem:[#allocation5 + $0xa8] sm:$0xf] }
  0x8e   :  { %1838 = vmatpush.bf16.msrb.mxu0 %v3345_v62  ;;  %v3694_v21 = vld [vmem:[#allocation5 + $0x730] sm:$0xf0]  ;;  %v3569_v26 = vor.u32 %v4318_v18, %v3566_v19  ;;  %v4282_v27 = vld [vmem:[#allocation5 + $0x504] sm:$0xf]  ;;  %v3140_v62 = vld [vmem:[#allocation5 + $0x2c8] sm:$0xf] }
  0x8f   :  { %1851 = vmatpush.bf16.msrb.mxu1 %v3473_v63  ;;  %1864 = vmatpush.bf16.msrb.mxu2 %v3601_v0  ;;  %v3294_v24 = vld [vmem:[#allocation5 + $0x410] sm:$0xf0]  ;;  %v4314_v29 = vld [vmem:[#allocation5 + $0x604] sm:$0xf]  ;;  %v3697_v30 = vor.u32 %v4350_v20, %v3694_v21  ;;  %v4213_v63 = vld [vmem:[#allocation5 + $0x2d4] sm:$0xf0] }
  0x90   :  { %1877 = vmatpush.bf16.msrb.mxu3 %v3729_v4  ;;  %v3422_v28 = vld [vmem:[#allocation5 + $0x510] sm:$0xf0]  ;;  %v4346_v35 = vld [vmem:[#allocation5 + $0x704] sm:$0xf]  ;;  %v3297_v45 = vor.u32 %v4250_v23, %v3294_v24  ;;  %v3268_v0 = vld [vmem:[#allocation5 + $0x3c8] sm:$0xf]  ;;  %v3141_v4 = vor.u32 %v4213_v63, %v3140_v62 }
  0x91   :  { %v3550_v31 = vld [vmem:[#allocation5 + $0x610] sm:$0xf0]  ;;  %v3425_v49 = vor.u32 %v4282_v27, %v3422_v28  ;;  %v4145_v6 = vld [vmem:[#allocation5 + $0xb4] sm:$0xf0]  ;;  %v2996_v7 = vld [vmem:[#allocation5 + $0x1a8] sm:$0xf]  ;;  %v3269_v8 = vor.u32 %v4245_v1, %v3268_v0 }
  0x92   :  { %1839 = vmatpush.bf16.msrb.mxu0 %v3329_v10  ;;  %v3678_v36 = vld [vmem:[#allocation5 + $0x710] sm:$0xf0]  ;;  %v3553_v50 = vor.u32 %v4314_v29, %v3550_v31  ;;  %v4177_v9 = vld [vmem:[#allocation5 + $0x1b4] sm:$0xf0]  ;;  %v3124_v10 = vld [vmem:[#allocation5 + $0x2a8] sm:$0xf]  ;;  %v2869_v14 = vor.u32 %v4145_v6, %v2868_v5 }
  0x93   :  { %1852 = vmatpush.bf16.msrb.mxu1 %v3457_v11  ;;  %1865 = vmatpush.bf16.msrb.mxu2 %v3585_v12  ;;  %v3681_v53 = vor.u32 %v4346_v35, %v3678_v36  ;;  %v4209_v11 = vld [vmem:[#allocation5 + $0x2b4] sm:$0xf0]  ;;  %v3252_v12 = vld [vmem:[#allocation5 + $0x3a8] sm:$0xf]  ;;  %v2997_v15 = vor.u32 %v4177_v9, %v2996_v7 }
  0x94   :  { %1878 = vmatpush.bf16.msrb.mxu3 %v3713_v16  ;;  %v4241_v13 = vld [vmem:[#allocation5 + $0x3b4] sm:$0xf0]  ;;  %v3125_v16 = vor.u32 %v4209_v11, %v3124_v10  ;;  %v2852_v17 = vld [vmem:[#allocation5 + $0x88] sm:$0xf] }
  0x95   :  { %v4141_v18 = vld [vmem:[#allocation5 + $0x94] sm:$0xf0]  ;;  %v2980_v19 = vld [vmem:[#allocation5 + $0x188] sm:$0xf]  ;;  %v3253_v20 = vor.u32 %v4241_v13, %v3252_v12 }
  0x96   :  { %1840 = vmatpush.bf16.msrb.mxu0 %v3313_v22  ;;  %v4173_v21 = vld [vmem:[#allocation5 + $0x194] sm:$0xf0]  ;;  %v3108_v22 = vld [vmem:[#allocation5 + $0x288] sm:$0xf] }
  0x97   :  { %1853 = vmatpush.bf16.msrb.mxu1 %v3441_v25  ;;  %1866 = vmatpush.bf16.msrb.mxu2 %v3569_v26  ;;  %v4205_v23 = vld [vmem:[#allocation5 + $0x294] sm:$0xf0]  ;;  %v3236_v24 = vld [vmem:[#allocation5 + $0x388] sm:$0xf]  ;;  %v2853_v26 = vor.u32 %v4141_v18, %v2852_v17  ;;  %v2981_v27 = vor.u32 %v4173_v21, %v2980_v19 }
  0x98   :  { %1879 = vmatpush.bf16.msrb.mxu3 %v3697_v30  ;;  %v4237_v25 = vld [vmem:[#allocation5 + $0x394] sm:$0xf0]  ;;  %v3109_v28 = vor.u32 %v4205_v23, %v3108_v22  ;;  %v2836_v29 = vld [vmem:[#allocation5 + $0x68] sm:$0xf] }
  0x99   :  { %v4137_v30 = vld [vmem:[#allocation5 + $0x74] sm:$0xf0]  ;;  %v2964_v31 = vld [vmem:[#allocation5 + $0x168] sm:$0xf]  ;;  %v3237_v35 = vor.u32 %v4237_v25, %v3236_v24 }
  0x9a   :  { %1841 = vmatpush.bf16.msrb.mxu0 %v3297_v45  ;;  %v4169_v36 = vld [vmem:[#allocation5 + $0x174] sm:$0xf0]  ;;  %v3092_v39 = vld [vmem:[#allocation5 + $0x268] sm:$0xf]  ;;  %v2837_v46 = vor.u32 %v4137_v30, %v2836_v29 }
  0x9b   :  { %1854 = vmatpush.bf16.msrb.mxu1 %v3425_v49  ;;  %1867 = vmatpush.bf16.msrb.mxu2 %v3553_v50  ;;  %v4201_v43 = vld [vmem:[#allocation5 + $0x274] sm:$0xf0]  ;;  %v3220_v44 = vld [vmem:[#allocation5 + $0x368] sm:$0xf]  ;;  %v2965_v47 = vor.u32 %v4169_v36, %v2964_v31 }
  0x9c   :  { %1880 = vmatpush.bf16.msrb.mxu3 %v3681_v53  ;;  %v4233_v45 = vld [vmem:[#allocation5 + $0x374] sm:$0xf0]  ;;  %v3093_v48 = vor.u32 %v4201_v43, %v3092_v39  ;;  %v2820_v49 = vld [vmem:[#allocation5 + $0x48] sm:$0xf] }
  0x9d   :  { %1842 = vmatmul.bf16.vlgmr.msrb.gmra.mxu0 %v4705_v37  ;;  %v4133_v50 = vld [vmem:[#allocation5 + $0x54] sm:$0xf0]  ;;  %v2948_v51 = vld [vmem:[#allocation5 + $0x148] sm:$0xf]  ;;  %v3221_v52 = vor.u32 %v4233_v45, %v3220_v44 }
  0x9e   :  { %1886 = vmatpush.bf16.msra.mxu0 %v2901_v54  ;;  %1868 = vmatmul.bf16.vlgmr.msrb.gmra.mxu2 %v4703_v32  ;;  %v4165_v53 = vld [vmem:[#allocation5 + $0x154] sm:$0xf0]  ;;  %v3076_v54 = vld [vmem:[#allocation5 + $0x248] sm:$0xf]  ;;  %v2821_v58 = vor.u32 %v4133_v50, %v2820_v49 }
  0x9f   :  { %1899 = vmatpush.bf16.msra.mxu1 %v3029_v55  ;;  %1912 = vmatpush.bf16.msra.mxu2 %v3157_v56  ;;  %v4197_v55 = vld [vmem:[#allocation5 + $0x254] sm:$0xf0]  ;;  %v3204_v56 = vld [vmem:[#allocation5 + $0x348] sm:$0xf]  ;;  %v2949_v59 = vor.u32 %v4165_v53, %v2948_v51 }
  0xa0   :  { %1925 = vmatpush.bf16.msra.mxu3 %v3285_v60  ;;  %1855 = vmatmul.bf16.vlgmr.msrb.gmra.mxu1 %v4709_v40  ;;  %v4229_v57 = vld [vmem:[#allocation5 + $0x354] sm:$0xf0]  ;;  %v3077_v60 = vor.u32 %v4197_v55, %v3076_v54  ;;  %v2804_v61 = vld [vmem:[#allocation5 + $0x28] sm:$0xf] }
  0xa1   :  { %1881 = vmatmul.bf16.vlgmr.msrb.gmra.mxu3 %v4707_v38  ;;  %v4129_v62 = vld [vmem:[#allocation5 + $0x34] sm:$0xf0]  ;;  %v2932_v63 = vld [vmem:[#allocation5 + $0x128] sm:$0xf]  ;;  %v3205_v0 = vor.u32 %v4229_v57, %v3204_v56 }
  0xa2   :  { %1887 = vmatpush.bf16.msra.mxu0 %v2885_v2  ;;  %v4161_v1 = vld [vmem:[#allocation5 + $0x134] sm:$0xf0]  ;;  %v3060_v2 = vld [vmem:[#allocation5 + $0x228] sm:$0xf]  ;;  %v2805_v6 = vor.u32 %v4129_v62, %v2804_v61 }
  0xa3   :  { %1900 = vmatpush.bf16.msra.mxu1 %v3013_v3  ;;  %1913 = vmatpush.bf16.msra.mxu2 %v3141_v4  ;;  %v4193_v3 = vld [vmem:[#allocation5 + $0x234] sm:$0xf0]  ;;  %v3188_v4 = vld [vmem:[#allocation5 + $0x328] sm:$0xf]  ;;  %v2933_v9 = vor.u32 %v4161_v1, %v2932_v63 }
  0xa4   :  { %1926 = vmatpush.bf16.msra.mxu3 %v3269_v8  ;;  %v4225_v5 = vld [vmem:[#allocation5 + $0x334] sm:$0xf0]  ;;  %v2788_v7 = vld [vmem:[#allocation5 + $0x8] sm:$0xf]  ;;  %v3061_v10 = vor.u32 %v4193_v3, %v3060_v2 }
  0xa5   :  { %v4125_v8 = vld [vmem:[#allocation5 + $0x14] sm:$0xf0]  ;;  %v2916_v11 = vld [vmem:[#allocation5 + $0x108] sm:$0xf] }
  0xa6   :  { %1888 = vmatpush.bf16.msra.mxu0 %v2869_v14  ;;  %v4157_v12 = vld [vmem:[#allocation5 + $0x114] sm:$0xf0]  ;;  %v3044_v13 = vld [vmem:[#allocation5 + $0x208] sm:$0xf]  ;;  %v3189_v14 = vor.u32 %v4225_v5, %v3188_v4  ;;  %v2789_v21 = vor.u32 %v4125_v8, %v2788_v7 }
  0xa7   :  { %1901 = vmatpush.bf16.msra.mxu1 %v2997_v15  ;;  %1914 = vmatpush.bf16.msra.mxu2 %v3125_v16  ;;  %v4189_v15 = vld [vmem:[#allocation5 + $0x214] sm:$0xf0]  ;;  %v3172_v16 = vld [vmem:[#allocation5 + $0x308] sm:$0xf]  ;;  %v2917_v25 = vor.u32 %v4157_v12, %v2916_v11 }
  0xa8   :  { %1927 = vmatpush.bf16.msra.mxu3 %v3253_v20  ;;  %v4221_v17 = vld [vmem:[#allocation5 + $0x314] sm:$0xf0]  ;;  %v3412_v18 = vld [vmem:[#allocation5 + $0x4e8] sm:$0xf] }
  0xa9   :  { %v4281_v19 = vld [vmem:[#allocation5 + $0x4f4] sm:$0xf0]  ;;  %v3540_v20 = vld [vmem:[#allocation5 + $0x5e8] sm:$0xf]  ;;  %v3173_v29 = vor.u32 %v4221_v17, %v3172_v16 }
  0xaa   :  { %1889 = vmatpush.bf16.msra.mxu0 %v2853_v26  ;;  %v4313_v22 = vld [vmem:[#allocation5 + $0x5f4] sm:$0xf0]  ;;  %v3668_v23 = vld [vmem:[#allocation5 + $0x6e8] sm:$0xf]  ;;  %v3045_v26 = vor.u32 %v4189_v15, %v3044_v13  ;;  %v3413_v30 = vor.u32 %v4281_v19, %v3412_v18 }
  0xab   :  { %1902 = vmatpush.bf16.msra.mxu1 %v2981_v27  ;;  %1915 = vmatpush.bf16.msra.mxu2 %v3109_v28  ;;  %v4345_v24 = vld [vmem:[#allocation5 + $0x6f4] sm:$0xf0]  ;;  %v3796_v27 = vld [vmem:[#allocation5 + $0x7e8] sm:$0xf]  ;;  %v3541_v31 = vor.u32 %v4313_v22, %v3540_v20 }
  0xac   :  { %1928 = vmatpush.bf16.msra.mxu3 %v3237_v35  ;;  %v4377_v28 = vld [vmem:[#allocation5 + $0x7f4] sm:$0xf0]  ;;  %v3669_v35 = vor.u32 %v4345_v24, %v3668_v23  ;;  %v3396_v36 = vld [vmem:[#allocation5 + $0x4c8] sm:$0xf] }
  0xad   :  { %v4277_v39 = vld [vmem:[#allocation5 + $0x4d4] sm:$0xf0]  ;;  %v3524_v43 = vld [vmem:[#allocation5 + $0x5c8] sm:$0xf]  ;;  %v3797_v44 = vor.u32 %v4377_v28, %v3796_v27 }
  0xae   :  { %1890 = vmatpush.bf16.msra.mxu0 %v2837_v46  ;;  %v4309_v45 = vld [vmem:[#allocation5 + $0x5d4] sm:$0xf0]  ;;  %v3652_v46 = vld [vmem:[#allocation5 + $0x6c8] sm:$0xf]  ;;  %v3397_v50 = vor.u32 %v4277_v39, %v3396_v36 }
  0xaf   :  { %1903 = vmatpush.bf16.msra.mxu1 %v2965_v47  ;;  %1916 = vmatpush.bf16.msra.mxu2 %v3093_v48  ;;  %v4341_v47 = vld [vmem:[#allocation5 + $0x6d4] sm:$0xf0]  ;;  %v3780_v48 = vld [vmem:[#allocation5 + $0x7c8] sm:$0xf]  ;;  %v3525_v51 = vor.u32 %v4309_v45, %v3524_v43 }
  0xb0   :  { %1929 = vmatpush.bf16.msra.mxu3 %v3221_v52  ;;  %v4373_v49 = vld [vmem:[#allocation5 + $0x7d4] sm:$0xf0]  ;;  %v3653_v52 = vor.u32 %v4341_v47, %v3652_v46  ;;  %v3380_v53 = vld [vmem:[#allocation5 + $0x4a8] sm:$0xf] }
  0xb1   :  { %v4273_v54 = vld [vmem:[#allocation5 + $0x4b4] sm:$0xf0]  ;;  %v3508_v55 = vld [vmem:[#allocation5 + $0x5a8] sm:$0xf]  ;;  %v3781_v56 = vor.u32 %v4373_v49, %v3780_v48 }
  0xb2   :  { %1891 = vmatpush.bf16.msra.mxu0 %v2821_v58  ;;  %v4305_v57 = vld [vmem:[#allocation5 + $0x5b4] sm:$0xf0]  ;;  %v3636_v58 = vld [vmem:[#allocation5 + $0x6a8] sm:$0xf]  ;;  %v3381_v62 = vor.u32 %v4273_v54, %v3380_v53 }
  0xb3   :  { %1904 = vmatpush.bf16.msra.mxu1 %v2949_v59  ;;  %1917 = vmatpush.bf16.msra.mxu2 %v3077_v60  ;;  %v4337_v59 = vld [vmem:[#allocation5 + $0x6b4] sm:$0xf0]  ;;  %v3764_v60 = vld [vmem:[#allocation5 + $0x7a8] sm:$0xf]  ;;  %v3509_v63 = vor.u32 %v4305_v57, %v3508_v55 }
  0xb4   :  { %1930 = vmatpush.bf16.msra.mxu3 %v3205_v0  ;;  %v4369_v61 = vld [vmem:[#allocation5 + $0x7b4] sm:$0xf0]  ;;  %v3637_v0 = vor.u32 %v4337_v59, %v3636_v58  ;;  %v3364_v1 = vld [vmem:[#allocation5 + $0x488] sm:$0xf] }
  0xb5   :  { %v4269_v2 = vld [vmem:[#allocation5 + $0x494] sm:$0xf0]  ;;  %v3492_v3 = vld [vmem:[#allocation5 + $0x588] sm:$0xf]  ;;  %v3765_v4 = vor.u32 %v4369_v61, %v3764_v60 }
  0xb6   :  { %1892 = vmatpush.bf16.msra.mxu0 %v2805_v6  ;;  %v4301_v5 = vld [vmem:[#allocation5 + $0x594] sm:$0xf0]  ;;  %v3620_v6 = vld [vmem:[#allocation5 + $0x688] sm:$0xf] }
  0xb7   :  { %1905 = vmatpush.bf16.msra.mxu1 %v2933_v9  ;;  %1918 = vmatpush.bf16.msra.mxu2 %v3061_v10  ;;  %v4333_v7 = vld [vmem:[#allocation5 + $0x694] sm:$0xf0]  ;;  %v3748_v8 = vld [vmem:[#allocation5 + $0x788] sm:$0xf]  ;;  %v3365_v10 = vor.u32 %v4269_v2, %v3364_v1  ;;  %v3493_v11 = vor.u32 %v4301_v5, %v3492_v3 }
  0xb8   :  { %1931 = vmatpush.bf16.msra.mxu3 %v3189_v14  ;;  %v4365_v9 = vld [vmem:[#allocation5 + $0x794] sm:$0xf0]  ;;  %v3621_v12 = vor.u32 %v4333_v7, %v3620_v6  ;;  %v3348_v13 = vld [vmem:[#allocation5 + $0x468] sm:$0xf]  ;;  %v4151_v6 = vld [vmem:[#allocation5 + $0xec] sm:$0xf] }
  0xb9   :  { %v4265_v14 = vld [vmem:[#allocation5 + $0x474] sm:$0xf0]  ;;  %v3476_v15 = vld [vmem:[#allocation5 + $0x568] sm:$0xf]  ;;  %v3749_v16 = vor.u32 %v4365_v9, %v3748_v8  ;;  %v2902_v7 = vld [vmem:[#allocation5 + $0xf8] sm:$0xf0] }
  0xba   :  { %1893 = vmatpush.bf16.msra.mxu0 %v2789_v21  ;;  %v4297_v17 = vld [vmem:[#allocation5 + $0x574] sm:$0xf0]  ;;  %v3604_v18 = vld [vmem:[#allocation5 + $0x668] sm:$0xf]  ;;  %v3349_v22 = vor.u32 %v4265_v14, %v3348_v13  ;;  %v4183_v8 = vld [vmem:[#allocation5 + $0x1ec] sm:$0xf] }
  0xbb   :  { %1906 = vmatpush.bf16.msra.mxu1 %v2917_v25  ;;  %1919 = vmatpush.bf16.msra.mxu2 %v3045_v26  ;;  %v4329_v19 = vld [vmem:[#allocation5 + $0x674] sm:$0xf0]  ;;  %v3732_v20 = vld [vmem:[#allocation5 + $0x768] sm:$0xf]  ;;  %v3477_v24 = vor.u32 %v4297_v17, %v3476_v15  ;;  %v3158_v13 = vld [vmem:[#allocation5 + $0x2f8] sm:$0xf0] }
  0xbc   :  { %1932 = vmatpush.bf16.msra.mxu3 %v3173_v29  ;;  %v4361_v21 = vld [vmem:[#allocation5 + $0x774] sm:$0xf0]  ;;  %v3332_v23 = vld [vmem:[#allocation5 + $0x448] sm:$0xf]  ;;  %v3605_v25 = vor.u32 %v4329_v19, %v3604_v18  ;;  %v4247_v17 = vld [vmem:[#allocation5 + $0x3ec] sm:$0xf] }
  0xbd   :  { %1894 = vmatmul.bf16.vlgmr.msra.gmra.mxu0 %v4693_v34  ;;  %v4261_v26 = vld [vmem:[#allocation5 + $0x454] sm:$0xf0]  ;;  %v3460_v27 = vld [vmem:[#allocation5 + $0x548] sm:$0xf]  ;;  %v3733_v29 = vor.u32 %v4361_v21, %v3732_v20  ;;  %v3286_v18 = vld [vmem:[#allocation5 + $0x3f8] sm:$0xf0]  ;;  %v2905_v20 = vor.u32 %v4151_v6, %v2902_v7 }
  0xbe   :  { %1938 = vmatpush.bf16.msrb.mxu0 %v3413_v30  ;;  %1920 = vmatmul.bf16.vlgmr.msra.gmra.mxu2 %v4691_v33  ;;  %v4293_v28 = vld [vmem:[#allocation5 + $0x554] sm:$0xf0]  ;;  %v3588_v30 = vld [vmem:[#allocation5 + $0x648] sm:$0xf]  ;;  %v3333_v43 = vor.u32 %v4261_v26, %v3332_v23  ;;  %v4179_v26 = vld [vmem:[#allocation5 + $0x1cc] sm:$0xf] }
  0xbf   :  { %1951 = vmatpush.bf16.msrb.mxu1 %v3541_v31  ;;  %1964 = vmatpush.bf16.msrb.mxu2 %v3669_v35  ;;  %v4325_v31 = vld [vmem:[#allocation5 + $0x654] sm:$0xf0]  ;;  %v4727_v35 = vld [vmem:[#allocation7] sm:$0xf]  ;;  %v3716_v36 = vld [vmem:[#allocation5 + $0x748] sm:$0xf]  ;;  %v3461_v45 = vor.u32 %v4293_v28, %v3460_v27 }
  0xc0   :  { %1977 = vmatpush.bf16.msrb.mxu3 %v3797_v44  ;;  %1907 = vmatmul.bf16.vlgmr.msra.gmra.mxu1 %v4697_v42  ;;  %v4357_v39 = vld [vmem:[#allocation5 + $0x754] sm:$0xf0]  ;;  %v3316_v44 = vld [vmem:[#allocation5 + $0x428] sm:$0xf]  ;;  %v3589_v46 = vor.u32 %v4325_v31, %v3588_v30  ;;  %v390_v49 = vperm.slane %v4727_v35, 0 }
  0xc1   :  { %1933 = vmatmul.bf16.vlgmr.msra.gmra.mxu3 %v4695_v41  ;;  %v4257_v47 = vld [vmem:[#allocation5 + $0x434] sm:$0xf0]  ;;  %v3444_v48 = vld [vmem:[#allocation5 + $0x528] sm:$0xf]  ;;  %v3014_v30 = vld [vmem:[#allocation5 + $0x1d8] sm:$0xf0] }
  0xc2   :  { %1939 = vmatpush.bf16.msrb.mxu0 %v3397_v50  ;;  %v3717_v50 = vor.u32 %v4357_v39, %v3716_v36  ;;  %v4321_v53 = vld [vmem:[#allocation5 + $0x634] sm:$0xf0]  ;;  %v3700_v54 = vld [vmem:[#allocation5 + $0x728] sm:$0xf]  ;;  %v4211_v31 = vld [vmem:[#allocation5 + $0x2cc] sm:$0xf] }
  0xc3   :  { %1952 = vmatpush.bf16.msrb.mxu1 %v3525_v51  ;;  %1965 = vmatpush.bf16.msrb.mxu2 %v3653_v52  ;;  %v4289_v51 = vld [vmem:[#allocation5 + $0x534] sm:$0xf0]  ;;  %v3572_v52 = vld [vmem:[#allocation5 + $0x628] sm:$0xf]  ;;  %v3142_v36 = vld [vmem:[#allocation5 + $0x2d8] sm:$0xf0] }
  0xc4   :  { %1978 = vmatpush.bf16.msrb.mxu3 %v3781_v56  ;;  %v4353_v55 = vld [vmem:[#allocation5 + $0x734] sm:$0xf0]  ;;  %v3317_v56 = vor.u32 %v4257_v47, %v3316_v44  ;;  %v3300_v57 = vld [vmem:[#allocation5 + $0x408] sm:$0xf]  ;;  %v3445_v60 = vor.u32 %v4289_v51, %v3444_v48  ;;  %v3573_v61 = vor.u32 %v4321_v53, %v3572_v52  ;;  %v3270_v44 = vld [vmem:[#allocation5 + $0x3d8] sm:$0xf0]  ;;  %v3017_v47 = vor.u32 %v4179_v26, %v3014_v30 }
  0xc5   :  { %v4253_v58 = vld [vmem:[#allocation5 + $0x414] sm:$0xf0]  ;;  %v3701_v2 = vor.u32 %v4353_v55, %v3700_v54  ;;  %v3145_v48 = vor.u32 %v4211_v31, %v3142_v36  ;;  %v4175_v51 = vld [vmem:[#allocation5 + $0x1ac] sm:$0xf]  ;;  %v2998_v54 = vld [vmem:[#allocation5 + $0x1b8] sm:$0xf0] }
  0xc6   :  { %1940 = vmatpush.bf16.msrb.mxu0 %v3381_v62  ;;  %v3428_v62 = vld [vmem:[#allocation5 + $0x508] sm:$0xf]  ;;  %v4317_v3 = vld [vmem:[#allocation5 + $0x614] sm:$0xf0]  ;;  %v4207_v55 = vld [vmem:[#allocation5 + $0x2ac] sm:$0xf] }
  0xc7   :  { %1953 = vmatpush.bf16.msrb.mxu1 %v3509_v63  ;;  %1966 = vmatpush.bf16.msrb.mxu2 %v3637_v0  ;;  %v4285_v63 = vld [vmem:[#allocation5 + $0x514] sm:$0xf0]  ;;  %v3556_v0 = vld [vmem:[#allocation5 + $0x608] sm:$0xf]  ;;  %v3110_v6 = vld [vmem:[#allocation5 + $0x298] sm:$0xf0] }
  0xc8   :  { %1979 = vmatpush.bf16.msrb.mxu3 %v3765_v4  ;;  %v3684_v4 = vld [vmem:[#allocation5 + $0x708] sm:$0xf]  ;;  %v4349_v5 = vld [vmem:[#allocation5 + $0x714] sm:$0xf0]  ;;  %v3429_v15 = vor.u32 %v4285_v63, %v3428_v62  ;;  %v4139_v63 = vld [vmem:[#allocation5 + $0x8c] sm:$0xf] }
  0xc9   :  { %v3685_v19 = vor.u32 %v4349_v5, %v3684_v4  ;;  %v2982_v4 = vld [vmem:[#allocation5 + $0x198] sm:$0xf0]  ;;  %v4203_v5 = vld [vmem:[#allocation5 + $0x28c] sm:$0xf] }
  0xca   :  { %1941 = vmatpush.bf16.msrb.mxu0 %v3365_v10  ;;  %v3301_v10 = vor.u32 %v4253_v58, %v3300_v57  ;;  %v4239_v57 = vld [vmem:[#allocation5 + $0x3ac] sm:$0xf]  ;;  %v3254_v58 = vld [vmem:[#allocation5 + $0x3b8] sm:$0xf0] }
  0xcb   :  { %1954 = vmatpush.bf16.msrb.mxu1 %v3493_v11  ;;  %1967 = vmatpush.bf16.msrb.mxu2 %v3621_v12  ;;  %v3030_v11 = vld [vmem:[#allocation5 + $0x1f8] sm:$0xf0]  ;;  %v4215_v12 = vld [vmem:[#allocation5 + $0x2ec] sm:$0xf] }
  0xcc   :  { %1980 = vmatpush.bf16.msrb.mxu3 %v3749_v16  ;;  %v3557_v16 = vor.u32 %v4317_v3, %v3556_v0  ;;  %v3161_v23 = vor.u32 %v4215_v12, %v3158_v13  ;;  %v2854_v0 = vld [vmem:[#allocation5 + $0x98] sm:$0xf0]  ;;  %v3257_v3 = vor.u32 %v4239_v57, %v3254_v58  ;;  %v4235_v7 = vld [vmem:[#allocation5 + $0x38c] sm:$0xf]  ;;  %v3113_v12 = vor.u32 %v4203_v5, %v3110_v6 }
  0xcd   :  { %v1687_v59 = vpop.f32.mrf.mxu0  ;;  %v4135_v13 = vld [vmem:[#allocation5 + $0x6c] sm:$0xf]  ;;  %v2918_v6 = vld [vmem:[#allocation5 + $0x118] sm:$0xf0] }
  0xce   :  { %1942 = vmatpush.bf16.msrb.mxu0 %v3349_v22  ;;  %v1688_v1 = vadd.f32 %v1687_v59, %v390_v49  ;;  %v1700_v9 = vpop.f32.mrf.mxu1  ;;  %v3033_v22 = vor.u32 %v4183_v8, %v3030_v11  ;;  %v4143_v49 = vld [vmem:[#allocation5 + $0xac] sm:$0xf]  ;;  %v3238_v8 = vld [vmem:[#allocation5 + $0x398] sm:$0xf0] }
  0xcf   :  { %1955 = vmatpush.bf16.msrb.mxu1 %v3477_v24  ;;  %1968 = vmatpush.bf16.msrb.mxu2 %v3605_v25  ;;  %v4147_v24 = vld [vmem:[#allocation5 + $0xcc] sm:$0xf]  ;;  %v2886_v25 = vld [vmem:[#allocation5 + $0xd8] sm:$0xf0] }
  0xd0   :  { %1981 = vmatpush.bf16.msrb.mxu3 %v3733_v29  ;;  %v1701_v14 = vadd.f32 %v1700_v9, %v1688_v1  ;;  %v3289_v29 = vor.u32 %v4247_v17, %v3286_v18  ;;  %v4171_v1 = vld [vmem:[#allocation5 + $0x18c] sm:$0xf]  ;;  %v2857_v9 = vor.u32 %v4139_v63, %v2854_v0  ;;  %v3241_v18 = vor.u32 %v4235_v7, %v3238_v8  ;;  %v3190_v63 = vld [vmem:[#allocation5 + $0x338] sm:$0xf0] }
  0xd1   :  { %v2985_v11 = vor.u32 %v4171_v1, %v2982_v4  ;;  %v4163_v30 = vld [vmem:[#allocation5 + $0x14c] sm:$0xf] }
  0xd2   :  { %1943 = vmatpush.bf16.msrb.mxu0 %v3333_v43  ;;  %v4243_v43 = vld [vmem:[#allocation5 + $0x3cc] sm:$0xf] }
  0xd3   :  { %1956 = vmatpush.bf16.msrb.mxu1 %v3461_v45  ;;  %1969 = vmatpush.bf16.msrb.mxu2 %v3589_v46  ;;  %v1713_v21 = vpop.f32.mrf.mxu2  ;;  %v2889_v46 = vor.u32 %v4147_v24, %v2886_v25  ;;  %v3273_v53 = vor.u32 %v4243_v43, %v3270_v44  ;;  %v4195_v43 = vld [vmem:[#allocation5 + $0x24c] sm:$0xf]  ;;  %v3078_v44 = vld [vmem:[#allocation5 + $0x258] sm:$0xf0] }
  0xd4   :  { %1982 = vmatpush.bf16.msrb.mxu3 %v3717_v50  ;;  %v1714_v27 = vadd.f32 %v1713_v21, %v1701_v14  ;;  %v1726_v28 = vpop.f32.mrf.mxu3  ;;  %v2870_v50 = vld [vmem:[#allocation5 + $0xb8] sm:$0xf0]  ;;  %v4123_v1 = vld [vmem:[#allocation5 + $0xc] sm:$0xf] }
  0xd5   :  { %v1689_v39 = vpop.f32.mrf.mxu0  ;;  %v2873_v59 = vor.u32 %v4143_v49, %v2870_v50  ;;  %v2838_v14 = vld [vmem:[#allocation5 + $0x78] sm:$0xf0]  ;;  %v4155_v5 = vld [vmem:[#allocation5 + $0x10c] sm:$0xf] }
  0xd6   :  { %1944 = vmatpush.bf16.msrb.mxu0 %v3317_v56  ;;  %v1727_v45 = vadd.f32 %v1726_v28, %v1714_v27  ;;  %v1702_v52 = vpop.f32.mrf.mxu1  ;;  %v3126_v56 = vld [vmem:[#allocation5 + $0x2b8] sm:$0xf0]  ;;  %v2841_v25 = vor.u32 %v4135_v13, %v2838_v14  ;;  %v4131_v28 = vld [vmem:[#allocation5 + $0x4c] sm:$0xf] }
  0xd7   :  { %1957 = vmatpush.bf16.msrb.mxu1 %v3445_v60  ;;  %1970 = vmatpush.bf16.msrb.mxu2 %v3573_v61  ;;  %v3001_v61 = vor.u32 %v4175_v51, %v2998_v54  ;;  %v3129_v62 = vor.u32 %v4207_v55, %v3126_v56  ;;  %v3094_v21 = vld [vmem:[#allocation5 + $0x278] sm:$0xf0]  ;;  %v4127_v54 = vld [vmem:[#allocation5 + $0x2c] sm:$0xf] }
  0xd8   :  { %1983 = vmatpush.bf16.msrb.mxu3 %v3701_v2  ;;  %v2950_v39 = vld [vmem:[#allocation5 + $0x158] sm:$0xf0]  ;;  %v4159_v56 = vld [vmem:[#allocation5 + $0x12c] sm:$0xf] }
  0xd9   :  { %v2953_v52 = vor.u32 %v4163_v30, %v2950_v39  ;;  %v2806_v55 = vld [vmem:[#allocation5 + $0x38] sm:$0xf0]  ;;  %v4187_v7 = vld [vmem:[#allocation5 + $0x20c] sm:$0xf] }
  0xda   :  { %1945 = vmatpush.bf16.msrb.mxu0 %v3301_v10  ;;  %v2809_v0 = vor.u32 %v4127_v54, %v2806_v55  ;;  %v4279_v14 = vld [vmem:[#allocation5 + $0x4ec] sm:$0xf]  ;;  %v3398_v30 = vld [vmem:[#allocation5 + $0x4d8] sm:$0xf0] }
  0xdb   :  { %1958 = vmatpush.bf16.msrb.mxu1 %v3429_v15  ;;  %1971 = vmatpush.bf16.msrb.mxu2 %v3557_v16  ;;  %v1715_v60 = vpop.f32.mrf.mxu2  ;;  %v4167_v15 = vld [vmem:[#allocation5 + $0x16c] sm:$0xf]  ;;  %v3526_v39 = vld [vmem:[#allocation5 + $0x5d8] sm:$0xf0] }
  0xdc   :  { %1984 = vmatpush.bf16.msrb.mxu3 %v3685_v19  ;;  %v1728_v2 = vpop.f32.mrf.mxu3  ;;  %v2966_v19 = vld [vmem:[#allocation5 + $0x178] sm:$0xf0]  ;;  %v4191_v60 = vld [vmem:[#allocation5 + $0x22c] sm:$0xf] }
  0xdd   :  { %1946 = vmatmul.bf16.vlgmr.msrb.gmra.mxu0 %v4705_v37  ;;  %v2969_v26 = vor.u32 %v4167_v15, %v2966_v19  ;;  %v2790_v2 = vld [vmem:[#allocation5 + $0x18] sm:$0xf0]  ;;  %v4343_v19 = vld [vmem:[#allocation5 + $0x6ec] sm:$0xf] }
  0xde   :  { %1990 = vmatpush.bf16.msra.mxu0 %v2905_v20  ;;  %1972 = vmatmul.bf16.vlgmr.msrb.gmra.mxu2 %v4703_v32  ;;  %v1739_v10 = vpop.f32.mrf.mxu0  ;;  %v4199_v20 = vld [vmem:[#allocation5 + $0x26c] sm:$0xf]  ;;  %v3414_v15 = vld [vmem:[#allocation5 + $0x4f8] sm:$0xf0] }
  0xdf   :  { %2003 = vmatpush.bf16.msra.mxu1 %v3033_v22  ;;  %2016 = vmatpush.bf16.msra.mxu2 %v3161_v23  ;;  %v1740_v16 = vadd.f32 %v1739_v10, %v1727_v45  ;;  %v1752_v17 = vpop.f32.mrf.mxu1  ;;  %v4231_v22 = vld [vmem:[#allocation5 + $0x36c] sm:$0xf]  ;;  %v3222_v23 = vld [vmem:[#allocation5 + $0x378] sm:$0xf0]  ;;  %v3097_v27 = vor.u32 %v4199_v20, %v3094_v21  ;;  %v2921_v21 = vor.u32 %v4155_v5, %v2918_v6 }
  0xe0   :  { %2029 = vmatpush.bf16.msra.mxu3 %v3289_v29  ;;  %1959 = vmatmul.bf16.vlgmr.msrb.gmra.mxu1 %v4709_v40  ;;  %v2822_v29 = vld [vmem:[#allocation5 + $0x58] sm:$0xf0]  ;;  %v3225_v36 = vor.u32 %v4231_v22, %v3222_v23  ;;  %v4375_v23 = vld [vmem:[#allocation5 + $0x7ec] sm:$0xf] }
  0xe1   :  { %1985 = vmatmul.bf16.vlgmr.msrb.gmra.mxu3 %v4707_v38  ;;  %v1753_v24 = vadd.f32 %v1752_v17, %v1740_v16  ;;  %v2825_v49 = vor.u32 %v4131_v28, %v2822_v29  ;;  %v3046_v10 = vld [vmem:[#allocation5 + $0x218] sm:$0xf0]  ;;  %v4311_v16 = vld [vmem:[#allocation5 + $0x5ec] sm:$0xf]  ;;  %v2793_v17 = vor.u32 %v4123_v1, %v2790_v2 }
  0xe2   :  { %1991 = vmatpush.bf16.msra.mxu0 %v2889_v46  ;;  %v3670_v20 = vld [vmem:[#allocation5 + $0x6f8] sm:$0xf0]  ;;  %v3049_v22 = vor.u32 %v4187_v7, %v3046_v10  ;;  %v4275_v29 = vld [vmem:[#allocation5 + $0x4cc] sm:$0xf] }
  0xe3   :  { %2004 = vmatpush.bf16.msra.mxu1 %v3017_v47  ;;  %2017 = vmatpush.bf16.msra.mxu2 %v3145_v48  ;;  %v1765_v31 = vpop.f32.mrf.mxu2  ;;  %v4227_v47 = vld [vmem:[#allocation5 + $0x34c] sm:$0xf]  ;;  %v3206_v48 = vld [vmem:[#allocation5 + $0x358] sm:$0xf0]  ;;  %v3673_v28 = vor.u32 %v4343_v19, %v3670_v20 }
  0xe4   :  { %2030 = vmatpush.bf16.msra.mxu3 %v3273_v53  ;;  %v1766_v45 = vadd.f32 %v1765_v31, %v1753_v24  ;;  %v1778_v46 = vpop.f32.mrf.mxu3  ;;  %v3081_v53 = vor.u32 %v4195_v43, %v3078_v44  ;;  %v3209_v58 = vor.u32 %v4227_v47, %v3206_v48  ;;  %v3798_v24 = vld [vmem:[#allocation5 + $0x7f8] sm:$0xf0]  ;;  %v4307_v31 = vld [vmem:[#allocation5 + $0x5cc] sm:$0xf]  ;;  %v3401_v47 = vor.u32 %v4275_v29, %v3398_v30 }
  0xe5   :  { %v4339_v43 = vld [vmem:[#allocation5 + $0x6cc] sm:$0xf]  ;;  %v3654_v44 = vld [vmem:[#allocation5 + $0x6d8] sm:$0xf0]  ;;  %v3529_v48 = vor.u32 %v4307_v31, %v3526_v39 }
  0xe6   :  { %1992 = vmatpush.bf16.msra.mxu0 %v2873_v59  ;;  %v4734_v50 = vadd.f32 %v1778_v46, %v1766_v45  ;;  %v1741_v51 = vpop.f32.mrf.mxu0  ;;  %v2934_v59 = vld [vmem:[#allocation5 + $0x138] sm:$0xf0]  ;;  %v4371_v45 = vld [vmem:[#allocation5 + $0x7cc] sm:$0xf] }
  0xe7   :  { %2005 = vmatpush.bf16.msra.mxu1 %v3001_v61  ;;  %2018 = vmatpush.bf16.msra.mxu2 %v3129_v62  ;;  %v1754_v57 = vpop.f32.mrf.mxu1  ;;  %v3062_v61 = vld [vmem:[#allocation5 + $0x238] sm:$0xf0]  ;;  %v4223_v62 = vld [vmem:[#allocation5 + $0x32c] sm:$0xf] }
  0xe8   :  { %2031 = vmatpush.bf16.msra.mxu3 %v3257_v3  ;;  %v2937_v3 = vor.u32 %v4159_v56, %v2934_v59  ;;  %v3065_v4 = vor.u32 %v4191_v60, %v3062_v61  ;;  %v3782_v46 = vld [vmem:[#allocation5 + $0x7d8] sm:$0xf0]  ;;  %v4271_v51 = vld [vmem:[#allocation5 + $0x4ac] sm:$0xf] }
  0xe9   :  { %v3785_v54 = vor.u32 %v4371_v45, %v3782_v46  ;;  %v3510_v55 = vld [vmem:[#allocation5 + $0x5b8] sm:$0xf0]  ;;  %v4335_v56 = vld [vmem:[#allocation5 + $0x6ac] sm:$0xf] }
  0xea   :  { %1993 = vmatpush.bf16.msra.mxu0 %v2857_v9  ;;  %v3193_v9 = vor.u32 %v4223_v62, %v3190_v63  ;;  %v3638_v57 = vld [vmem:[#allocation5 + $0x6b8] sm:$0xf0]  ;;  %v4267_v63 = vld [vmem:[#allocation5 + $0x48c] sm:$0xf] }
  0xeb   :  { %2006 = vmatpush.bf16.msra.mxu1 %v2985_v11  ;;  %2019 = vmatpush.bf16.msra.mxu2 %v3113_v12  ;;  %v1767_v8 = vpop.f32.mrf.mxu2  ;;  %v4219_v11 = vld [vmem:[#allocation5 + $0x30c] sm:$0xf]  ;;  %v3174_v12 = vld [vmem:[#allocation5 + $0x318] sm:$0xf0]  ;;  %v3641_v62 = vor.u32 %v4335_v56, %v3638_v57  ;;  %v391_v56 = vperm.slane %v4727_v35, 1 }
  0xec   :  { %2032 = vmatpush.bf16.msra.mxu3 %v3241_v18  ;;  %v1780_v13 = vpop.f32.mrf.mxu3  ;;  %v3542_v18 = vld [vmem:[#allocation5 + $0x5f8] sm:$0xf0]  ;;  %v4363_v5 = vld [vmem:[#allocation5 + $0x78c] sm:$0xf] }
  0xed   :  { %v3766_v59 = vld [vmem:[#allocation5 + $0x7b8] sm:$0xf0]  ;;  %v4263_v8 = vld [vmem:[#allocation5 + $0x46c] sm:$0xf] }
  0xee   :  { %1994 = vmatpush.bf16.msra.mxu0 %v2841_v25  ;;  %v3177_v25 = vor.u32 %v4219_v11, %v3174_v12  ;;  %v3494_v2 = vld [vmem:[#allocation5 + $0x598] sm:$0xf0]  ;;  %v4295_v10 = vld [vmem:[#allocation5 + $0x56c] sm:$0xf] }
  0xef   :  { %2007 = vmatpush.bf16.msra.mxu1 %v2969_v26  ;;  %2020 = vmatpush.bf16.msra.mxu2 %v3097_v27  ;;  %v3417_v26 = vor.u32 %v4279_v14, %v3414_v15  ;;  %v3545_v27 = vor.u32 %v4311_v16, %v3542_v18  ;;  %v3478_v13 = vld [vmem:[#allocation5 + $0x578] sm:$0xf0]  ;;  %v4327_v14 = vld [vmem:[#allocation5 + $0x66c] sm:$0xf] }
  0xf0   :  { %2033 = vmatpush.bf16.msra.mxu3 %v3225_v36  ;;  %v3801_v36 = vor.u32 %v4375_v23, %v3798_v24  ;;  %v3606_v15 = vld [vmem:[#allocation5 + $0x678] sm:$0xf0]  ;;  %v4359_v16 = vld [vmem:[#allocation5 + $0x76c] sm:$0xf]  ;;  %v3481_v19 = vor.u32 %v4295_v10, %v3478_v13 }
  0xf1   :  { %v3609_v20 = vor.u32 %v4327_v14, %v3606_v15  ;;  %v4291_v23 = vld [vmem:[#allocation5 + $0x54c] sm:$0xf]  ;;  %v3718_v31 = vld [vmem:[#allocation5 + $0x758] sm:$0xf0] }
  0xf2   :  { %1995 = vmatpush.bf16.msra.mxu0 %v2825_v49  ;;  %v3657_v49 = vor.u32 %v4339_v43, %v3654_v44  ;;  %v4355_v30 = vld [vmem:[#allocation5 + $0x74c] sm:$0xf]  ;;  %v3318_v46 = vld [vmem:[#allocation5 + $0x438] sm:$0xf0] }
  0xf3   :  { %2008 = vmatpush.bf16.msra.mxu1 %v2953_v52  ;;  %2021 = vmatpush.bf16.msra.mxu2 %v3081_v53  ;;  %v3382_v52 = vld [vmem:[#allocation5 + $0x4b8] sm:$0xf0]  ;;  %v4303_v53 = vld [vmem:[#allocation5 + $0x5ac] sm:$0xf] }
  0xf4   :  { %2034 = vmatpush.bf16.msra.mxu3 %v3209_v58  ;;  %v4367_v58 = vld [vmem:[#allocation5 + $0x7ac] sm:$0xf]  ;;  %v3385_v60 = vor.u32 %v4271_v51, %v3382_v52  ;;  %v3513_v61 = vor.u32 %v4303_v53, %v3510_v55  ;;  %v3446_v51 = vld [vmem:[#allocation5 + $0x538] sm:$0xf0] }
  0xf5   :  { %v3769_v1 = vor.u32 %v4367_v58, %v3766_v59  ;;  %v4255_v45 = vld [vmem:[#allocation5 + $0x42c] sm:$0xf]  ;;  %v3574_v53 = vld [vmem:[#allocation5 + $0x638] sm:$0xf0] }
  0xf6   :  { %1996 = vmatpush.bf16.msra.mxu0 %v2809_v0  ;;  %v3366_v0 = vld [vmem:[#allocation5 + $0x498] sm:$0xf0]  ;;  %v4319_v52 = vld [vmem:[#allocation5 + $0x62c] sm:$0xf]  ;;  %v3321_v57 = vor.u32 %v4255_v45, %v3318_v46  ;;  %v3828_v45 = vld [vmem:[#allocation8 + $0x30] sm:$0xf] }
  0xf7   :  { %2009 = vmatpush.bf16.msra.mxu1 %v2937_v3  ;;  %2022 = vmatpush.bf16.msra.mxu2 %v3065_v4  ;;  %v4331_v3 = vld [vmem:[#allocation5 + $0x68c] sm:$0xf]  ;;  %v3622_v4 = vld [vmem:[#allocation5 + $0x698] sm:$0xf0]  ;;  %v3892_v46 = vld [vmem:[#allocation8 + $0xb0] sm:$0xf] }
  0xf8   :  { %2035 = vmatpush.bf16.msra.mxu3 %v3193_v9  ;;  %v3625_v7 = vor.u32 %v4331_v3, %v3622_v4  ;;  %v3350_v9 = vld [vmem:[#allocation5 + $0x478] sm:$0xf0]  ;;  %v4251_v58 = vld [vmem:[#allocation5 + $0x40c] sm:$0xf] }
  0xf9   :  { %v3353_v18 = vor.u32 %v4263_v8, %v3350_v9  ;;  %v3702_v55 = vld [vmem:[#allocation5 + $0x738] sm:$0xf0]  ;;  %v4347_v3 = vld [vmem:[#allocation5 + $0x70c] sm:$0xf] }
  0xfa   :  { %1997 = vmatpush.bf16.msra.mxu0 %v2793_v17  ;;  %v4740_v6 = vpop.f32.mrf.mxu0  ;;  %v3734_v17 = vld [vmem:[#allocation5 + $0x778] sm:$0xf0] }
  0xfb   :  { %2010 = vmatpush.bf16.msra.mxu1 %v2921_v21  ;;  %2023 = vmatpush.bf16.msra.mxu2 %v3049_v22  ;;  %v4259_v21 = vld [vmem:[#allocation5 + $0x44c] sm:$0xf]  ;;  %v3334_v22 = vld [vmem:[#allocation5 + $0x458] sm:$0xf0] }
  0xfc   :  { %2036 = vmatpush.bf16.msra.mxu3 %v3177_v25  ;;  %v3737_v25 = vor.u32 %v4359_v16, %v3734_v17  ;;  %v4393_v35 = vld [vmem:[#allocation8 + $0x74] sm:$0xf0]  ;;  %v3852_v16 = vld [vmem:[#allocation8 + $0x60] sm:$0xf]  ;;  %v4391_v17 = vld [vmem:[#allocation8 + $0x64] sm:$0xf0] }
  0xfd   :  { %1998 = vmatmul.bf16.vlgmr.msra.gmra.mxu0 %v4693_v34  ;;  %v3750_v34 = vld [vmem:[#allocation5 + $0x798] sm:$0xf0]  ;;  %v4742_v11 = vpop.f32.mrf.mxu1 }
  0xfe   :  { %2042 = vmatpush.bf16.msrb.mxu0 %v3417_v26  ;;  %2024 = vmatmul.bf16.vlgmr.msra.gmra.mxu2 %v4691_v33  ;;  %v4299_v33 = vld [vmem:[#allocation5 + $0x58c] sm:$0xf]  ;;  %v3753_v12 = vor.u32 %v4363_v5, %v3750_v34  ;;  %v3462_v26 = vld [vmem:[#allocation5 + $0x558] sm:$0xf0]  ;;  %v3860_v34 = vld [vmem:[#allocation8 + $0x70] sm:$0xf] }
  0xff   :  { %2055 = vmatpush.bf16.msrb.mxu1 %v3545_v27  ;;  %2068 = vmatpush.bf16.msrb.mxu2 %v3673_v28  ;;  %v4323_v27 = vld [vmem:[#allocation5 + $0x64c] sm:$0xf]  ;;  %v3590_v28 = vld [vmem:[#allocation5 + $0x658] sm:$0xf0]  ;;  %v3465_v43 = vor.u32 %v4291_v23, %v3462_v26  ;;  %v3861_v13 = vor.u32 %v4393_v35, %v3860_v34  ;;  %v3876_v34 = vld [vmem:[#allocation8 + $0x90] sm:$0xf] }
 0x100   :  { %2081 = vmatpush.bf16.msrb.mxu3 %v3801_v36  ;;  %2011 = vmatmul.bf16.vlgmr.msra.gmra.mxu1 %v4697_v42  ;;  %v3497_v42 = vor.u32 %v4299_v33, %v3494_v2  ;;  %v3337_v36 = vor.u32 %v4259_v21, %v3334_v22  ;;  %v3593_v44 = vor.u32 %v4323_v27, %v3590_v28  ;;  %v3558_v2 = vld [vmem:[#allocation5 + $0x618] sm:$0xf0]  ;;  %v3844_v22 = vld [vmem:[#allocation8 + $0x50] sm:$0xf] }
 0x101   :  { %2037 = vmatmul.bf16.vlgmr.msra.gmra.mxu3 %v4695_v41  ;;  %v3369_v41 = vor.u32 %v4267_v63, %v3366_v0  ;;  %v4744_v24 = vpop.f32.mrf.mxu2  ;;  %v3430_v63 = vld [vmem:[#allocation5 + $0x518] sm:$0xf0] }
 0x102   :  { %2043 = vmatpush.bf16.msrb.mxu0 %v3401_v47  ;;  %v1793_v39 = vpop.f32.mrf.mxu0  ;;  %v4287_v47 = vld [vmem:[#allocation5 + $0x52c] sm:$0xf]  ;;  %v3686_v5 = vld [vmem:[#allocation5 + $0x718] sm:$0xf0] }
 0x103   :  { %2056 = vmatpush.bf16.msrb.mxu1 %v3529_v48  ;;  %2069 = vmatpush.bf16.msrb.mxu2 %v3657_v49  ;;  %v3721_v49 = vor.u32 %v4355_v30, %v3718_v31  ;;  %v3449_v59 = vor.u32 %v4287_v47, %v3446_v51  ;;  %v4409_v8 = vld [vmem:[#allocation8 + $0xf4] sm:$0xf0]  ;;  %v4387_v30 = vld [vmem:[#allocation8 + $0x44] sm:$0xf0]  ;;  %v3900_v31 = vld [vmem:[#allocation8 + $0xc0] sm:$0xf] }
 0x104   :  { %2082 = vmatpush.bf16.msrb.mxu3 %v3785_v54  ;;  %v4746_v29 = vpop.f32.mrf.mxu3  ;;  %v4351_v54 = vld [vmem:[#allocation5 + $0x72c] sm:$0xf]  ;;  %v4389_v23 = vld [vmem:[#allocation8 + $0x54] sm:$0xf0] }
 0x105   :  { %v1806_v48 = vpop.f32.mrf.mxu1  ;;  %v3705_v33 = vor.u32 %v4351_v54, %v3702_v55  ;;  %v3845_v26 = vor.u32 %v4389_v23, %v3844_v22  ;;  %v4425_v39 = vld [vmem:[#allocation8 + $0x174] sm:$0xf0]  ;;  %v4423_v51 = vld [vmem:[#allocation8 + $0x164] sm:$0xf0]  ;;  %v4408_v22 = vld [vmem:[#allocation8 + $0xf4] sm:$0xf] }
 0x106   :  { %2044 = vmatpush.bf16.msrb.mxu0 %v3385_v60  ;;  %v3577_v60 = vor.u32 %v4319_v52, %v3574_v53  ;;  %v3926_v23 = vld [vmem:[#allocation8 + $0xf8] sm:$0xf0] }
 0x107   :  { %2057 = vmatpush.bf16.msrb.mxu1 %v3513_v61  ;;  %2070 = vmatpush.bf16.msrb.mxu2 %v3641_v62  ;;  %v3302_v61 = vld [vmem:[#allocation5 + $0x418] sm:$0xf0]  ;;  %v4283_v62 = vld [vmem:[#allocation5 + $0x50c] sm:$0xf] }
 0x108   :  { %2083 = vmatpush.bf16.msrb.mxu3 %v3769_v1  ;;  %v4315_v1 = vld [vmem:[#allocation5 + $0x60c] sm:$0xf]  ;;  %v3433_v9 = vor.u32 %v4283_v62, %v3430_v63  ;;  %v3972_v62 = vld [vmem:[#allocation8 + $0x150] sm:$0xf]  ;;  %v4421_v63 = vld [vmem:[#allocation8 + $0x154] sm:$0xf0] }
 0x109   :  { %v1819_v0 = vpop.f32.mrf.mxu2  ;;  %v3561_v10 = vor.u32 %v4315_v1, %v3558_v2 }
 0x10a   :  { %2045 = vmatpush.bf16.msrb.mxu0 %v3369_v41  ;;  %v1792_v41 = vadd.f32 %v4740_v6, %v391_v56  ;;  %v3853_v6 = vor.u32 %v4391_v17, %v3852_v16  ;;  %v3820_v56 = vld [vmem:[#allocation8 + $0x20] sm:$0xf]  ;;  %v3973_v0 = vor.u32 %v4421_v63, %v3972_v62  ;;  %v4395_v16 = vld [vmem:[#allocation8 + $0x84] sm:$0xf0]  ;;  %v4392_v17 = vld [vmem:[#allocation8 + $0x74] sm:$0xf] }
 0x10b   :  { %2058 = vmatpush.bf16.msrb.mxu1 %v3497_v42  ;;  %2071 = vmatpush.bf16.msrb.mxu2 %v3625_v7  ;;  %v3305_v42 = vor.u32 %v4251_v58, %v3302_v61  ;;  %v3924_v7 = vld [vmem:[#allocation8 + $0xf0] sm:$0xf]  ;;  %v3884_v58 = vld [vmem:[#allocation8 + $0xa0] sm:$0xf]  ;;  %v4402_v62 = vld [vmem:[#allocation8 + $0xc4] sm:$0xf] }
 0x10c   :  { %2084 = vmatpush.bf16.msrb.mxu3 %v3753_v12  ;;  %v1832_v4 = vpop.f32.mrf.mxu3  ;;  %v3689_v12 = vor.u32 %v4347_v3, %v3686_v5  ;;  %v3925_v14 = vor.u32 %v4409_v8, %v3924_v7  ;;  %v1805_v15 = vadd.f32 %v4742_v11, %v1792_v41  ;;  %v3908_v11 = vld [vmem:[#allocation8 + $0xd0] sm:$0xf]  ;;  %v4381_v5 = vld [vmem:[#allocation8 + $0x14] sm:$0xf0]  ;;  %v4419_v7 = vld [vmem:[#allocation8 + $0x144] sm:$0xf0] }
 0x10d   :  { %v3812_v4 = vld [vmem:[#allocation8 + $0x10] sm:$0xf]  ;;  %v4397_v41 = vld [vmem:[#allocation8 + $0x94] sm:$0xf0]  ;;  %v3902_v63 = vld [vmem:[#allocation8 + $0xc8] sm:$0xf0] }
 0x10e   :  { %2046 = vmatpush.bf16.msrb.mxu0 %v3353_v18  ;;  %v3916_v18 = vld [vmem:[#allocation8 + $0xe0] sm:$0xf]  ;;  %v1818_v21 = vadd.f32 %v4744_v24, %v1805_v15  ;;  %v4403_v24 = vld [vmem:[#allocation8 + $0xc4] sm:$0xf0] }
 0x10f   :  { %2059 = vmatpush.bf16.msrb.mxu1 %v3481_v19  ;;  %2072 = vmatpush.bf16.msrb.mxu2 %v3609_v20  ;;  %v4407_v19 = vld [vmem:[#allocation8 + $0xe4] sm:$0xf0]  ;;  %v3868_v15 = vld [vmem:[#allocation8 + $0x80] sm:$0xf] }
 0x110   :  { %2085 = vmatpush.bf16.msrb.mxu3 %v3737_v25  ;;  %v3917_v20 = vor.u32 %v4407_v19, %v3916_v18  ;;  %v4405_v25 = vld [vmem:[#allocation8 + $0xd4] sm:$0xf0]  ;;  %v1831_v27 = vadd.f32 %v4746_v29, %v1818_v21  ;;  %v3862_v19 = vld [vmem:[#allocation8 + $0x78] sm:$0xf0] }
 0x111   :  { %v3909_v28 = vor.u32 %v4405_v25, %v3908_v11  ;;  %v4401_v29 = vld [vmem:[#allocation8 + $0xb4] sm:$0xf0] }
 0x112   :  { %2047 = vmatpush.bf16.msrb.mxu0 %v3337_v36  ;;  %v3988_v36 = vld [vmem:[#allocation8 + $0x170] sm:$0xf]  ;;  %v3893_v55 = vor.u32 %v4401_v29, %v3892_v46  ;;  %v4417_v21 = vld [vmem:[#allocation8 + $0x134] sm:$0xf0]  ;;  %v3846_v29 = vld [vmem:[#allocation8 + $0x58] sm:$0xf0] }
 0x113   :  { %2060 = vmatpush.bf16.msrb.mxu1 %v3465_v43  ;;  %2073 = vmatpush.bf16.msrb.mxu2 %v3593_v44  ;;  %v3989_v43 = vor.u32 %v4425_v39, %v3988_v36  ;;  %v3901_v44 = vor.u32 %v4403_v24, %v3900_v31  ;;  %v3929_v31 = vor.u32 %v4408_v22, %v3926_v23  ;;  %v3854_v24 = vld [vmem:[#allocation8 + $0x68] sm:$0xf0]  ;;  %v3948_v36 = vld [vmem:[#allocation8 + $0x120] sm:$0xf]  ;;  %v4415_v39 = vld [vmem:[#allocation8 + $0x124] sm:$0xf0] }
 0x114   :  { %2086 = vmatpush.bf16.msrb.mxu3 %v3721_v49  ;;  %v3980_v49 = vld [vmem:[#allocation8 + $0x160] sm:$0xf]  ;;  %v4413_v46 = vld [vmem:[#allocation8 + $0x114] sm:$0xf0]  ;;  %v3814_v22 = vld [vmem:[#allocation8 + $0x18] sm:$0xf0] }
 0x115   :  { %v3981_v52 = vor.u32 %v4423_v51, %v3980_v49  ;;  %v4404_v49 = vld [vmem:[#allocation8 + $0xd4] sm:$0xf] }
 0x116   :  { %2048 = vmatpush.bf16.msrb.mxu0 %v3321_v57  ;;  %v4383_v57 = vld [vmem:[#allocation8 + $0x24] sm:$0xf0]  ;;  %v4396_v23 = vld [vmem:[#allocation8 + $0x94] sm:$0xf] }
 0x117   :  { %2061 = vmatpush.bf16.msrb.mxu1 %v3449_v59  ;;  %2074 = vmatpush.bf16.msrb.mxu2 %v3577_v60  ;;  %v4399_v60 = vld [vmem:[#allocation8 + $0xa4] sm:$0xf0] }
 0x118   :  { %2087 = vmatpush.bf16.msrb.mxu3 %v3705_v33  ;;  %v3821_v33 = vor.u32 %v4383_v57, %v3820_v56  ;;  %v3885_v3 = vor.u32 %v4399_v60, %v3884_v58  ;;  %v3990_v56 = vld [vmem:[#allocation8 + $0x178] sm:$0xf0]  ;;  %v3838_v60 = vld [vmem:[#allocation8 + $0x48] sm:$0xf0] }
 0x11a   :  { %2049 = vmatpush.bf16.msrb.mxu0 %v3305_v42  ;;  %v3964_v42 = vld [vmem:[#allocation8 + $0x140] sm:$0xf] }
 0x11b   :  { %2062 = vmatpush.bf16.msrb.mxu1 %v3433_v9  ;;  %2075 = vmatpush.bf16.msrb.mxu2 %v3561_v10  ;;  %v3965_v8 = vor.u32 %v4419_v7, %v3964_v42  ;;  %v3813_v10 = vor.u32 %v4381_v5, %v3812_v4  ;;  %v4400_v4 = vld [vmem:[#allocation8 + $0xb4] sm:$0xf]  ;;  %v3982_v42 = vld [vmem:[#allocation8 + $0x168] sm:$0xf0] }
 0x11c   :  { %2088 = vmatpush.bf16.msrb.mxu3 %v3689_v12  ;;  %v3804_v12 = vld [vmem:[#allocation8] sm:$0xf] }
 0x11d   :  { %2050 = vmatmul.bf16.vlgmr.msrb.gmra.mxu0 %v4705_v37  ;;  %v3836_v37 = vld [vmem:[#allocation8 + $0x40] sm:$0xf]  ;;  %v1856_v48 = vpop.f32.mrf.mxu1 }
 0x11e   :  { %2492 = vmatpush.bf16.msra.mxu0 %v3861_v13  ;;  %2063 = vmatmul.bf16.vlgmr.msrb.gmra.mxu1 %v4709_v40  ;;  %v3837_v40 = vor.u32 %v4387_v30, %v3836_v37  ;;  %v4379_v13 = vld [vmem:[#allocation8 + $0x4] sm:$0xf0]  ;;  %v3865_v37 = vor.u32 %v4392_v17, %v3862_v19  ;;  %v4390_v30 = vld [vmem:[#allocation8 + $0x64] sm:$0xf]  ;;  %v3974_v17 = vld [vmem:[#allocation8 + $0x158] sm:$0xf0] }
 0x11f   :  { %2505 = vmatpush.bf16.msra.mxu1 %v3925_v14  ;;  %2076 = vmatmul.bf16.vlgmr.msrb.gmra.mxu2 %v4703_v32  ;;  %v1843_v32 = vpop.f32.mrf.mxu0  ;;  %v3877_v14 = vor.u32 %v4397_v41, %v3876_v34  ;;  %v3894_v34 = vld [vmem:[#allocation8 + $0xb8] sm:$0xf0]  ;;  %v4422_v41 = vld [vmem:[#allocation8 + $0x164] sm:$0xf] }
 0x120   :  { %2089 = vmatmul.bf16.vlgmr.msrb.gmra.mxu3 %v4707_v38  ;;  %v4385_v38 = vld [vmem:[#allocation8 + $0x34] sm:$0xf0]  ;;  %v1844_v47 = vadd.f32 %v1843_v32, %v1831_v27  ;;  %2518 = vmatpush.bf16.msra.mxu2 %v3989_v43  ;;  %v2094_v27 = vmax.f32 %v4734_v50, 0.0  ;;  %v4406_v43 = vld [vmem:[#allocation8 + $0xe4] sm:$0xf]  ;;  %v3949_v32 = vor.u32 %v4415_v39, %v3948_v36  ;;  %v3857_v50 = vor.u32 %v4390_v30, %v3854_v24 }
 0x121   :  { %v3829_v53 = vor.u32 %v4385_v38, %v3828_v45  ;;  %v1869_v59 = vpop.f32.mrf.mxu2  ;;  %v3940_v38 = vld [vmem:[#allocation8 + $0x110] sm:$0xf]  ;;  %v3985_v7 = vor.u32 %v4422_v41, %v3982_v42  ;;  %v4378_v36 = vld [vmem:[#allocation8 + $0x4] sm:$0xf] }
 0x122   :  { %2493 = vmatpush.bf16.msra.mxu0 %v3853_v6  ;;  %v1857_v54 = vadd.f32 %v1856_v48, %v1844_v47  ;;  %v4760_v45 = vpack.c.bf16 %v2094_v27, %v2094_v27  ;;  %v4388_v48 = vld [vmem:[#allocation8 + $0x54] sm:$0xf]  ;;  %v3941_v51 = vor.u32 %v4413_v46, %v3940_v38  ;;  %v4418_v27 = vld [vmem:[#allocation8 + $0x144] sm:$0xf]  ;;  %v3870_v38 = vld [vmem:[#allocation8 + $0x88] sm:$0xf0] }
 0x123   :  { %2506 = vmatpush.bf16.msra.mxu1 %v3917_v20  ;;  %v3956_v20 = vld [vmem:[#allocation8 + $0x130] sm:$0xf]  ;;  %v3849_v57 = vor.u32 %v4388_v48, %v3846_v29  ;;  %v4414_v29 = vld [vmem:[#allocation8 + $0x124] sm:$0xf] }
 0x124   :  { %2519 = vmatpush.bf16.msra.mxu2 %v3981_v52  ;;  %v1882_v61 = vpop.f32.mrf.mxu3  ;;  %v1870_v1 = vadd.f32 %v1869_v59, %v1857_v54  ;;  %v3957_v11 = vor.u32 %v4417_v21, %v3956_v20  ;;  %v3910_v52 = vld [vmem:[#allocation8 + $0xd8] sm:$0xf0]  ;;  %v4411_v54 = vld [vmem:[#allocation8 + $0x104] sm:$0xf0]  ;;  %v4386_v59 = vld [vmem:[#allocation8 + $0x44] sm:$0xf] }
 0x125   :  { %v1858_v35 = vpop.f32.mrf.mxu1  ;;  %v3913_v58 = vor.u32 %v4404_v49, %v3910_v52  ;;  %v4380_v21 = vld [vmem:[#allocation8 + $0x14] sm:$0xf]  ;;  %v3950_v49 = vld [vmem:[#allocation8 + $0x128] sm:$0xf0] }
 0x126   :  { %2494 = vmatpush.bf16.msra.mxu0 %v3845_v26  ;;  %v1883_v9 = vadd.f32 %v1882_v61, %v1870_v1  ;;  %v3805_v26 = vor.u32 %v4379_v13, %v3804_v12  ;;  %v3905_v1 = vor.u32 %v4402_v62, %v3902_v63  ;;  %v3822_v12 = vld [vmem:[#allocation8 + $0x28] sm:$0xf0]  ;;  %v4398_v13 = vld [vmem:[#allocation8 + $0xa4] sm:$0xf]  ;;  %v3817_v30 = vor.u32 %v4380_v21, %v3814_v22  ;;  %v4431_v21 = vld [vmem:[#allocation8 + $0x1a4] sm:$0xf0] }
 0x127   :  { %2507 = vmatpush.bf16.msra.mxu1 %v3909_v28  ;;  %v1845_v2 = vpop.f32.mrf.mxu0  ;;  %v3869_v28 = vor.u32 %v4395_v16, %v3868_v15  ;;  %v4420_v16 = vld [vmem:[#allocation8 + $0x154] sm:$0xf]  ;;  %v4410_v62 = vld [vmem:[#allocation8 + $0x104] sm:$0xf]  ;;  %v3934_v63 = vld [vmem:[#allocation8 + $0x108] sm:$0xf0] }
 0x128   :  { %2520 = vmatpush.bf16.msra.mxu2 %v3973_v0  ;;  %v2095_v25 = vmax.f32 %v1883_v9, 0.0  ;;  %v4384_v2 = vld [vmem:[#allocation8 + $0x34] sm:$0xf]  ;;  %v3897_v9 = vor.u32 %v4400_v4, %v3894_v34  ;;  %v3977_v19 = vor.u32 %v4420_v16, %v3974_v17  ;;  %v4437_v34 = vld [vmem:[#allocation8 + $0x1d4] sm:$0xf0] }
 0x129   :  { %v1871_v18 = vpop.f32.mrf.mxu2 }
 0x12a   :  { %2495 = vmatpush.bf16.msra.mxu0 %v3837_v40  ;;  %v3918_v40 = vld [vmem:[#allocation8 + $0xe8] sm:$0xf0] }
 0x12b   :  { %2508 = vmatpush.bf16.msra.mxu1 %v3901_v44  ;;  %v4758_v44 = vpack.c.bf16 %v2095_v25, %v2095_v25  ;;  %v3921_v47 = vor.u32 %v4406_v43, %v3918_v40  ;;  %v3878_v25 = vld [vmem:[#allocation8 + $0x98] sm:$0xf0]  ;;  %v3806_v43 = vld [vmem:[#allocation8 + $0x8] sm:$0xf0]  ;;  %v4416_v40 = vld [vmem:[#allocation8 + $0x134] sm:$0xf] }
 0x12c   :  { %2521 = vmatpush.bf16.msra.mxu2 %v3965_v8  ;;  %v1884_v6 = vpop.f32.mrf.mxu3  ;;  %v3881_v39 = vor.u32 %v4396_v23, %v3878_v25 }
 0x12e   :  { %2496 = vmatpush.bf16.msra.mxu0 %v3829_v53  ;;  %v3932_v53 = vld [vmem:[#allocation8 + $0x100] sm:$0xf] }
 0x12f   :  { %2509 = vmatpush.bf16.msra.mxu1 %v3893_v55  ;;  %v4424_v55 = vld [vmem:[#allocation8 + $0x174] sm:$0xf]  ;;  %v3933_v61 = vor.u32 %v4411_v54, %v3932_v53  ;;  %v3809_v53 = vor.u32 %v4378_v36, %v3806_v43  ;;  %v4441_v54 = vld [vmem:[#allocation8 + $0x1f4] sm:$0xf0] }
 0x130   :  { %2522 = vmatpush.bf16.msra.mxu2 %v3957_v11  ;;  %v3993_v0 = vor.u32 %v4424_v55, %v3990_v56  ;;  %v4440_v36 = vld [vmem:[#allocation8 + $0x1f4] sm:$0xf] }
 0x132   :  { %2497 = vmatpush.bf16.msra.mxu0 %v3821_v33  ;;  %v3841_v33 = vor.u32 %v4386_v59, %v3838_v60  ;;  %v3942_v59 = vld [vmem:[#allocation8 + $0x118] sm:$0xf0] }
 0x133   :  { %2510 = vmatpush.bf16.msra.mxu1 %v3885_v3  ;;  %v3830_v3 = vld [vmem:[#allocation8 + $0x38] sm:$0xf0] }
 0x134   :  { %2523 = vmatpush.bf16.msra.mxu2 %v3949_v32  ;;  %v3833_v8 = vor.u32 %v4384_v2, %v3830_v3  ;;  %v3958_v32 = vld [vmem:[#allocation8 + $0x138] sm:$0xf0]  ;;  %v4044_v2 = vld [vmem:[#allocation8 + $0x1e0] sm:$0xf]  ;;  %v4439_v3 = vld [vmem:[#allocation8 + $0x1e4] sm:$0xf0] }
 0x135   :  { %v4045_v4 = vor.u32 %v4439_v3, %v4044_v2  ;;  %v4006_v2 = vld [vmem:[#allocation8 + $0x198] sm:$0xf0] }
 0x136   :  { %2498 = vmatpush.bf16.msra.mxu0 %v3813_v10  ;;  %v4382_v10 = vld [vmem:[#allocation8 + $0x24] sm:$0xf] }
 0x137   :  { %2511 = vmatpush.bf16.msra.mxu1 %v3877_v14  ;;  %v3886_v14 = vld [vmem:[#allocation8 + $0xa8] sm:$0xf0]  ;;  %v3825_v6 = vor.u32 %v4382_v10, %v3822_v12 }
 0x138   :  { %2524 = vmatpush.bf16.msra.mxu2 %v3941_v51  ;;  %v3889_v20 = vor.u32 %v4398_v13, %v3886_v14  ;;  %v4052_v51 = vld [vmem:[#allocation8 + $0x1f0] sm:$0xf] }
 0x139   :  { %v4053_v56 = vor.u32 %v4441_v54, %v4052_v51  ;;  %v4020_v14 = vld [vmem:[#allocation8 + $0x1b0] sm:$0xf] }
 0x13a   :  { %2499 = vmatpush.bf16.msra.mxu0 %v3805_v26  ;;  %v1895_v5 = vpop.f32.mrf.mxu0 }
 0x13b   :  { %2512 = vmatpush.bf16.msra.mxu1 %v3869_v28  ;;  %v3966_v28 = vld [vmem:[#allocation8 + $0x148] sm:$0xf0]  ;;  %2531 = vmatpush.bf16.msra.mxu3 %v4053_v56 }
 0x13c   :  { %2525 = vmatpush.bf16.msra.mxu2 %v3933_v61 }
 0x13d   :  { %2500 = vmatmul.bf16.vlgmr.msra.gmra.mxu0 %v4760_v45  ;;  %v4764_v35 = vpop.f32.mrf.mxu1 }
 0x13e   :  { %2544 = vmatpush.bf16.msrb.mxu0 %v3865_v37  ;;  %2513 = vmatmul.bf16.vlgmr.msra.gmra.mxu1 %v4758_v44  ;;  %v3969_v37 = vor.u32 %v4418_v27, %v3966_v28  ;;  %v4429_v27 = vld [vmem:[#allocation8 + $0x194] sm:$0xf0] }
 0x13f   :  { %2557 = vmatpush.bf16.msrb.mxu1 %v3929_v31  ;;  %v4766_v31 = vld [vmem:[#allocation7] sm:$0xf]  ;;  %2532 = vmatpush.bf16.msra.mxu3 %v4045_v4 }
 0x140   :  { %2570 = vmatpush.bf16.msrb.mxu2 %v3993_v0  ;;  %v392_v24 = vperm.slane %v4766_v31, 2 }
 0x141   :  { %v1921_v15 = vpop.f32.mrf.mxu2 }
 0x142   :  { %2545 = vmatpush.bf16.msrb.mxu0 %v3857_v50  ;;  %v1897_v11 = vpop.f32.mrf.mxu0  ;;  %v4394_v50 = vld [vmem:[#allocation8 + $0x84] sm:$0xf]  ;;  %v1896_v52 = vadd.f32 %v1895_v5, %v392_v24  ;;  %v4036_v5 = vld [vmem:[#allocation8 + $0x1d0] sm:$0xf] }
 0x143   :  { %2558 = vmatpush.bf16.msrb.mxu1 %v3921_v47  ;;  %v3961_v47 = vor.u32 %v4416_v40, %v3958_v32  ;;  %v3873_v55 = vor.u32 %v4394_v50, %v3870_v38  ;;  %v4438_v40 = vld [vmem:[#allocation8 + $0x1e4] sm:$0xf]  ;;  %v4046_v32 = vld [vmem:[#allocation8 + $0x1e8] sm:$0xf0] }
 0x144   :  { %2571 = vmatpush.bf16.msrb.mxu2 %v3985_v7  ;;  %v1934_v18 = vpop.f32.mrf.mxu3  ;;  %v1909_v60 = vadd.f32 %v4764_v35, %v1896_v52  ;;  %v4037_v7 = vor.u32 %v4437_v34, %v4036_v5  ;;  %v4049_v38 = vor.u32 %v4438_v40, %v4046_v32  ;;  %v4434_v52 = vld [vmem:[#allocation8 + $0x1c4] sm:$0xf]  ;;  %v3998_v34 = vld [vmem:[#allocation8 + $0x188] sm:$0xf0]  ;;  %v4457_v40 = vld [vmem:[#allocation10 + $0x78] sm:$0xff] }
 0x145   :  { %v1910_v26 = vpop.f32.mrf.mxu1  ;;  %v4426_v5 = vld [vmem:[#allocation8 + $0x184] sm:$0xf]  ;;  %v4448_v32 = vld [vmem:[#allocation10 + $0x30] sm:$0xff] }
 0x146   :  { %2546 = vmatpush.bf16.msrb.mxu0 %v3849_v57  ;;  %v3953_v57 = vor.u32 %v4414_v29, %v3950_v49  ;;  %v1922_v0 = vadd.f32 %v1921_v15, %v1909_v60  ;;  %2533 = vmatpush.bf16.msra.mxu3 %v4037_v7  ;;  %v4433_v15 = vld [vmem:[#allocation8 + $0x1b4] sm:$0xf0]  ;;  %v4004_v26 = vld [vmem:[#allocation8 + $0x190] sm:$0xf] }
 0x147   :  { %2559 = vmatpush.bf16.msrb.mxu1 %v3913_v58  ;;  %v4412_v58 = vld [vmem:[#allocation8 + $0x114] sm:$0xf]  ;;  %v4005_v28 = vor.u32 %v4429_v27, %v4004_v26 }
 0x148   :  { %2572 = vmatpush.bf16.msrb.mxu2 %v3977_v19  ;;  %v3945_v61 = vor.u32 %v4412_v58, %v3942_v59  ;;  %v4021_v19 = vor.u32 %v4433_v15, %v4020_v14  ;;  %v4022_v58 = vld [vmem:[#allocation8 + $0x1b8] sm:$0xf0]  ;;  %v393_v59 = vperm.slane %v4766_v31, 3 }
 0x149   :  { %v1923_v46 = vpop.f32.mrf.mxu2 }
 0x14a   :  { %2547 = vmatpush.bf16.msrb.mxu0 %v3841_v33  ;;  %v3937_v33 = vor.u32 %v4410_v62, %v3934_v63  ;;  %v4014_v62 = vld [vmem:[#allocation8 + $0x1a8] sm:$0xf0] }
 0x14b   :  { %2560 = vmatpush.bf16.msrb.mxu1 %v3905_v1  ;;  %v1935_v1 = vadd.f32 %v1934_v18, %v1922_v0 }
 0x14c   :  { %2573 = vmatpush.bf16.msrb.mxu2 %v3969_v37  ;;  %v1936_v48 = vpop.f32.mrf.mxu3  ;;  %v3996_v37 = vld [vmem:[#allocation8 + $0x180] sm:$0xf] }
 0x14d   :  { %v4038_v48 = vld [vmem:[#allocation8 + $0x1d8] sm:$0xf0] }
 0x14e   :  { %2548 = vmatpush.bf16.msrb.mxu0 %v3833_v8  ;;  %v4028_v8 = vld [vmem:[#allocation8 + $0x1c0] sm:$0xf] }
 0x14f   :  { %2561 = vmatpush.bf16.msrb.mxu1 %v3897_v9  ;;  %v4435_v9 = vld [vmem:[#allocation8 + $0x1c4] sm:$0xf0] }
 0x150   :  { %2574 = vmatpush.bf16.msrb.mxu2 %v3961_v47  ;;  %v4436_v47 = vld [vmem:[#allocation8 + $0x1d4] sm:$0xf] }
 0x151   :  { %v4041_v29 = vor.u32 %v4436_v47, %v4038_v48  ;;  %v4446_v47 = vld [vmem:[#allocation10 + $0x20] sm:$0xff]  ;;  %v4445_v48 = vld [vmem:[#allocation10 + $0x18] sm:$0xff] }
 0x152   :  { %2549 = vmatpush.bf16.msrb.mxu0 %v3825_v6 }
 0x153   :  { %2562 = vmatpush.bf16.msrb.mxu1 %v3889_v20  ;;  %v4012_v20 = vld [vmem:[#allocation8 + $0x1a0] sm:$0xf] }
 0x154   :  { %2575 = vmatpush.bf16.msrb.mxu2 %v3953_v57  ;;  %v4013_v11 = vor.u32 %v4431_v21, %v4012_v20  ;;  %v4432_v57 = vld [vmem:[#allocation8 + $0x1b4] sm:$0xf] }
 0x155   :  { %v4025_v60 = vor.u32 %v4432_v57, %v4022_v58  ;;  %v4453_v57 = vld [vmem:[#allocation10 + $0x58] sm:$0xff]  ;;  %v4452_v58 = vld [vmem:[#allocation10 + $0x50] sm:$0xff] }
 0x156   :  { %2550 = vmatpush.bf16.msrb.mxu0 %v3817_v30  ;;  %v4427_v30 = vld [vmem:[#allocation8 + $0x184] sm:$0xf0] }
 0x157   :  { %2563 = vmatpush.bf16.msrb.mxu1 %v3881_v39  ;;  %v3997_v24 = vor.u32 %v4427_v30, %v3996_v37  ;;  %v4054_v39 = vld [vmem:[#allocation8 + $0x1f8] sm:$0xf0] }
 0x158   :  { %2576 = vmatpush.bf16.msrb.mxu2 %v3945_v61  ;;  %v4057_v43 = vor.u32 %v4440_v36, %v4054_v39  ;;  %v4430_v61 = vld [vmem:[#allocation8 + $0x1a4] sm:$0xf] }
 0x15a   :  { %2551 = vmatpush.bf16.msrb.mxu0 %v3809_v53  ;;  %v1947_v35 = vpop.f32.mrf.mxu0  ;;  %v4030_v53 = vld [vmem:[#allocation8 + $0x1c8] sm:$0xf0] }
 0x15b   :  { %2564 = vmatpush.bf16.msrb.mxu1 %v3873_v55  ;;  %v1948_v41 = vadd.f32 %v1947_v35, %v1935_v1  ;;  %v4033_v55 = vor.u32 %v4434_v52, %v4030_v53  ;;  %v4428_v1 = vld [vmem:[#allocation8 + $0x194] sm:$0xf]  ;;  %v4443_v53 = vld [vmem:[#allocation10 + $0x8] sm:$0xff] }
 0x15c   :  { %2577 = vmatpush.bf16.msrb.mxu2 %v3937_v33  ;;  %v4017_v33 = vor.u32 %v4430_v61, %v4014_v62  ;;  %v4009_v4 = vor.u32 %v4428_v1, %v4006_v2 }
 0x15d   :  { %2552 = vmatmul.bf16.vlgmr.msrb.gmra.mxu0 %v4760_v45  ;;  %v1960_v42 = vpop.f32.mrf.mxu1 }
 0x15e   :  { %2565 = vmatmul.bf16.vlgmr.msrb.gmra.mxu1 %v4758_v44  ;;  %v1961_v45 = vadd.f32 %v1960_v42, %v1948_v41  ;;  %v4029_v44 = vor.u32 %v4435_v9, %v4028_v8  ;;  %v4001_v41 = vor.u32 %v4426_v5, %v3998_v34 }
 0x15f   :  { %2745 = vmatpush.bf16.msra.mxu1 %v4457_v40 }
 0x160   :  { %2534 = vmatpush.bf16.msra.mxu3 %v4029_v44 }
 0x161   :  { %v1973_v10 = vpop.f32.mrf.mxu2 }
 0x162   :  { %v1974_v12 = vadd.f32 %v1973_v10, %v1961_v45  ;;  %v1949_v17 = vpop.f32.mrf.mxu0 }
 0x164   :  { %v1986_v13 = vpop.f32.mrf.mxu3  ;;  %2535 = vmatpush.bf16.msra.mxu3 %v4021_v19 }
 0x165   :  { %v1987_v16 = vadd.f32 %v1986_v13, %v1974_v12  ;;  %v1962_v18 = vpop.f32.mrf.mxu1 }
 0x167   :  { %v2096_v6 = vmax.f32 %v1987_v16, 0.0 }
 0x168   :  { %2536 = vmatpush.bf16.msra.mxu3 %v4013_v11 }
 0x169   :  { %v2100_v22 = vpack.c.bf16 %v2096_v6, %v2096_v6  ;;  %v1975_v23 = vpop.f32.mrf.mxu2  ;;  %v2166_v6 = vld [vmem:[%s4786_s4] sm:$0x3] }
 0x16a   :  { %v2168_v20 = vperm.slane %v2166_v6, 0  ;;  %v2169_v27 = vperm.slane %v2166_v6, 1 }
 0x16b   :  { %2526 = vmatmul.bf16.vlgmr.msra.gmra.mxu2 %v2100_v22 }
 0x16c   :  { %v1988_v25 = vpop.f32.mrf.mxu3  ;;  %2537 = vmatpush.bf16.msra.mxu3 %v4005_v28 }
 0x170   :  { %2538 = vmatpush.bf16.msra.mxu3 %v3997_v24 }
 0x174   :  { %2583 = vmatpush.bf16.msrb.mxu3 %v4057_v43  ;;  %v4449_v43 = vld [vmem:[#allocation10 + $0x38] sm:$0xff] }
 0x175   :  { %2732 = vmatpush.bf16.msra.mxu0 %v4449_v43 }
 0x178   :  { %2584 = vmatpush.bf16.msrb.mxu3 %v4049_v38  ;;  %v4447_v38 = vld [vmem:[#allocation10 + $0x28] sm:$0xff] }
 0x179   :  { %2733 = vmatpush.bf16.msra.mxu0 %v4448_v32 }
 0x17a   :  { %v1999_v50 = vpop.f32.mrf.mxu0 }
 0x17b   :  { %2578 = vmatmul.bf16.vlgmr.msrb.gmra.mxu2 %v2100_v22  ;;  %v2000_v3 = vadd.f32 %v1999_v50, %v393_v59  ;;  %v4456_v50 = vld [vmem:[#allocation10 + $0x70] sm:$0xff]  ;;  %v4451_v59 = vld [vmem:[#allocation10 + $0x48] sm:$0xff] }
 0x17c   :  { %2585 = vmatpush.bf16.msrb.mxu3 %v4041_v29  ;;  %2746 = vmatpush.bf16.msra.mxu1 %v4456_v50 }
 0x17d   :  { %v2012_v46 = vpop.f32.mrf.mxu1  ;;  %2734 = vmatpush.bf16.msra.mxu0 %v4447_v38 }
 0x17e   :  { %v2013_v35 = vadd.f32 %v2012_v46, %v2000_v3 }
 0x180   :  { %2586 = vmatpush.bf16.msrb.mxu3 %v4033_v55  ;;  %v4442_v55 = vld [vmem:[#allocation10] sm:$0xff] }
 0x181   :  { %v2025_v49 = vpop.f32.mrf.mxu2  ;;  %2735 = vmatpush.bf16.msra.mxu0 %v4446_v47 }
 0x182   :  { %v2001_v54 = vpop.f32.mrf.mxu0  ;;  %v2026_v42 = vadd.f32 %v2025_v49, %v2013_v35  ;;  %v4444_v49 = vld [vmem:[#allocation10 + $0x10] sm:$0xff] }
 0x183   :  { %v4455_v54 = vld [vmem:[#allocation10 + $0x68] sm:$0xff] }
 0x184   :  { %v2038_v51 = vpop.f32.mrf.mxu3  ;;  %2587 = vmatpush.bf16.msrb.mxu3 %v4025_v60  ;;  %2747 = vmatpush.bf16.msra.mxu1 %v4455_v54  ;;  %v4450_v60 = vld [vmem:[#allocation10 + $0x40] sm:$0xff] }
 0x185   :  { %v2014_v56 = vpop.f32.mrf.mxu1  ;;  %v2039_v31 = vadd.f32 %v2038_v51, %v2026_v42  ;;  %2736 = vmatpush.bf16.msra.mxu0 %v4445_v48 }
 0x186   :  { %v4454_v56 = vld [vmem:[#allocation10 + $0x60] sm:$0xff] }
 0x188   :  { %2588 = vmatpush.bf16.msrb.mxu3 %v4017_v33  ;;  %2748 = vmatpush.bf16.msra.mxu1 %v4454_v56 }
 0x189   :  { %v2027_v63 = vpop.f32.mrf.mxu2  ;;  %2737 = vmatpush.bf16.msra.mxu0 %v4444_v49 }
 0x18c   :  { %v2040_v0 = vpop.f32.mrf.mxu3  ;;  %2589 = vmatpush.bf16.msrb.mxu3 %v4009_v4  ;;  %2749 = vmatpush.bf16.msra.mxu1 %v4453_v57 }
 0x18d   :  { %2738 = vmatpush.bf16.msra.mxu0 %v4443_v53 }
 0x190   :  { %2590 = vmatpush.bf16.msrb.mxu3 %v4001_v41  ;;  %2750 = vmatpush.bf16.msra.mxu1 %v4452_v58 }
 0x191   :  { %2739 = vmatpush.bf16.msra.mxu0 %v4442_v55 }
 0x194   :  { %2751 = vmatpush.bf16.msra.mxu1 %v4451_v59 }
 0x198   :  { %2752 = vmatpush.bf16.msra.mxu1 %v4450_v60 }
 0x19a   :  { %v2051_v7 = vpop.f32.mrf.mxu0 }
 0x19b   :  { %v2064_v45 = vpop.f32.mrf.mxu1  ;;  %v2052_v8 = vadd.f32 %v2051_v7, %v2039_v31  ;;  %v4470_v31 = vld [vmem:[%s4788_s6] ss:$0 sm:$0xff] }
 0x19d   :  { %v2065_v9 = vadd.f32 %v2064_v45, %v2052_v8 }
 0x1a2   :  { %v2077_v10 = vpop.f32.mrf.mxu2  ;;  %v2053_v13 = vpop.f32.mrf.mxu0 }
 0x1a3   :  { %v2078_v44 = vadd.f32 %v2077_v10, %v2065_v9  ;;  %v2090_v12 = vpop.f32.mrf.mxu3  ;;  %v2066_v14 = vpop.f32.mrf.mxu1 }
 0x1a5   :  { %v2091_v15 = vadd.f32 %v2090_v12, %v2078_v44 }
 0x1a7   :  { %v2097_v16 = vmax.f32 %v2091_v15, 0.0 }
 0x1a9   :  { %v2101_v17 = vpack.c.bf16 %v2097_v16, %v2097_v16 }
 0x1aa   :  { %v2079_v18 = vpop.f32.mrf.mxu2 }
 0x1ab   :  { %v2092_v19 = vpop.f32.mrf.mxu3  ;;  %2539 = vmatmul.bf16.vlgmr.msra.gmra.mxu3 %v2101_v17 }
 0x1ba   :  { %v2501_v21 = vpop.f32.mrf.mxu0 }
 0x1bb   :  { %v2502_v22 = vadd.f32 %v2501_v21, %v2168_v20  ;;  %v2514_v23 = vpop.f32.mrf.mxu1  ;;  %2591 = vmatmul.bf16.vlgmr.msrb.gmra.mxu3 %v2101_v17 }
 0x1bd   :  { %v2515_v11 = vadd.f32 %v2514_v23, %v2502_v22 }
 0x1c2   :  { %v2503_v25 = vpop.f32.mrf.mxu0 }
 0x1c3   :  { %v2516_v26 = vpop.f32.mrf.mxu1 }
 0x1da   :  { %v2553_v28 = vpop.f32.mrf.mxu0 }
 0x1db   :  { %v2554_v37 = vadd.f32 %v2553_v28, %v2169_v27  ;;  %v2566_v30 = vpop.f32.mrf.mxu1 }
 0x1dd   :  { %v2567_v24 = vadd.f32 %v2566_v30, %v2554_v37 }
 0x1e2   :  { %v2555_v36 = vpop.f32.mrf.mxu0 }
 0x1e3   :  { %v2568_v39 = vpop.f32.mrf.mxu1 }
 0x1ee   :  { %v2527_v46 = vpop.f32.mrf.mxu2 }
 0x1ef   :  { %v2528_v61 = vadd.f32 %v2527_v46, %v2515_v11 }
 0x1f6   :  { %v2529_v29 = vpop.f32.mrf.mxu2 }
 0x1fe   :  { %v2579_v51 = vpop.f32.mrf.mxu2 }
 0x1ff   :  { %v2580_v2 = vadd.f32 %v2579_v51, %v2567_v24 }
 0x206   :  { %v2581_v52 = vpop.f32.mrf.mxu2 }
 0x22e   :  { %v2540_v62 = vpop.f32.mrf.mxu3 }
 0x22f   :  { %v2541_v63 = vadd.f32 %v2540_v62, %v2528_v61 }
 0x231   :  { %v2596_v0 = vmax.f32 %v2541_v63, 0.0 }
 0x233   :  { %v2598_v33 = vpack.c.bf16 %v2596_v0, %v2596_v0 }
 0x235   :  { %2740 = vmatmul.bf16.vlgmr.msra.gmra.mxu0 %v2598_v33 }
 0x236   :  { %v2542_v1 = vpop.f32.mrf.mxu3 }
 0x23e   :  { %v2592_v3 = vpop.f32.mrf.mxu3 }
 0x23f   :  { %v2593_v4 = vadd.f32 %v2592_v3, %v2580_v2 }
 0x241   :  { %v2597_v5 = vmax.f32 %v2593_v4, 0.0 }
 0x243   :  { %v2599_v34 = vpack.c.bf16 %v2597_v5, %v2597_v5 }
 0x245   :  { %2753 = vmatmul.bf16.vlgmr.msra.gmra.mxu1 %v2599_v34 }
 0x246   :  { %v2594_v35 = vpop.f32.mrf.mxu3 }
 0x2b2   :  { %v2741_v41 = vpop.f32.mrf.mxu0 }
 0x2b3   :  { %v2742_v7 = vadd.f32 %v4470_v31, %v2741_v41 }
 0x2ba   :  { %v2743_v42 = vpop.f32.mrf.mxu0 }
 0x2c2   :  { %v2754_v45 = vpop.f32.mrf.mxu1 }
 0x2c3   :  { %v2755_v8 = vadd.f32 %v2754_v45, %v2742_v7 }
 0x2c5   :  { %2758 = vst [vmem:[#allocation11] sm:$0x3] %v2755_v8 }
 0x2c6   :  { %2769 = dma.vmem_to_hbm [thread:$0]  %s2765_s8, 32, %s2767_s11, [#allocation4]  }
 0x2ca   :  { %v2756_v9 = vpop.f32.mrf.mxu1 }
 0x2cb   :  { %4622 = dma.done.wait [#allocation4], 32  }
 0x2cc   :  { %4623 = vsyncadd [#allocation4], 4294967264 }
 0x2cd   :  { %2774 = vsyncpa [#allocation3], 1 }
 0x2ce   :  { %2775 = vsyncpa [#allocation6], 1 }
 0x2cf   :  { %2776 = vsyncpa [#allocation9], 1 }
 0x2d0   :  { %2777 = vsyncpa [#allocation4], 1 }

</bundles_post_ra>
